<compile_context>
chip_gen: v7x
topology: tpu7x:2x2x1
jax: 0.10.0
libtpu: 0.0.40
codegen_flags: <defaults>
</compile_context>

<pallas_src>
import jax
import jax.numpy as jnp
from jax.experimental import pallas as pl
from jax.experimental.pallas import tpu as pltpu

# ---- module constants from the spec ----
N_EMBD     = 256                  # C
BLOCK_SIZE = 128                  # max context length
HEAD_SIZE  = 64                   # head_size passed to Head(head_size)
HS_PAD     = 128                  # q/k padded to a full lane tile
SCALE      = HEAD_SIZE ** -0.5    # k.shape[-1] ** -0.5 in the PyTorch code
NEG_BIG    = -1e30                # finite "-inf" for the causal mask


# ----------------------------- Pallas kernel -----------------------------
def head_kernel(x_ref, wqkv_ref, o_ref):
    """out = softmax(mask(q k^T)) v  for BB batch elements per grid step.

    x_ref    : (BB, T, C)        bf16
    wqkv_ref : (C, 3*HS_PAD)     bf16  -- [Wq*SCALE | Wk | Wv], q/k/v padded 64 -> 128
    o_ref    : (BB, T, HEAD_SIZE) f32  -- only the valid 64 lanes are stored
    """
    BB, T, C = x_ref.shape

    # Fused QKV projection: one (BB*T, C) @ (C, 384) bf16 MXU matmul.
    x2d = x_ref[...].reshape(BB * T, C)                               # (BB*T, C) bf16
    qkv = jnp.dot(x2d, wqkv_ref[...],
                  preferred_element_type=jnp.float32)                 # (BB*T, 384) f32
    qkv = qkv.astype(jnp.bfloat16).reshape(BB, T, 3 * HS_PAD)

    # Causal mask, built once per grid step (shared by all BB batches).
    row = jax.lax.broadcasted_iota(jnp.int32, (T, T), 0)
    col = jax.lax.broadcasted_iota(jnp.int32, (T, T), 1)
    causal = row >= col

    for b in range(BB):                                               # static unroll
        q = qkv[b, :, 0:HS_PAD]                                       # (T, 128) bf16
        k = qkv[b, :, HS_PAD:2 * HS_PAD]                              # (T, 128) bf16
        v = qkv[b, :, 2 * HS_PAD:2 * HS_PAD + HEAD_SIZE]              # (T, 64)  bf16

        # Scores: q @ k^T (contraction over the padded-to-zero lane dim is
        # exact; SCALE is already folded into Wq).
        wei = jax.lax.dot_general(
            q, k, (((1,), (1,)), ((), ())),
            preferred_element_type=jnp.float32)                       # (T, T) f32
        wei = jnp.where(causal, wei, NEG_BIG)

        # Numerically stable softmax in f32; reciprocal on the EUP slot.
        wei = wei - jnp.max(wei, axis=-1, keepdims=True)
        p = jnp.exp(wei)
        p = p * pl.reciprocal(jnp.sum(p, axis=-1, keepdims=True), approx=True)

        # TODO(synk): dropout(p) skipped (eval-mode identity).
        o_ref[b] = jnp.dot(p.astype(jnp.bfloat16), v,
                           preferred_element_type=jnp.float32)        # (T, 64) f32


# --------------------------- wrapper / pallas_call ---------------------------
def _pack_qkv(wq, wk, wv):
    """[Wq*SCALE | Wk | Wv] -> one lane-aligned (C, 3*128) bf16 matrix."""
    def pad(w):
        return jnp.pad(w, ((0, 0), (0, HS_PAD - HEAD_SIZE)))
    wqkv = jnp.concatenate([pad(wq * SCALE), pad(wk), pad(wv)], axis=1)
    return wqkv.astype(jnp.bfloat16)


def head_forward(x, wq, wk, wv):
    """x: (B, T, C) with T <= BLOCK_SIZE (multiple of 8). Returns (B, T, HEAD_SIZE) f32."""
    B, T, C = x.shape
    wqkv = _pack_qkv(wq, wk, wv)                       # (C, 3*HS_PAD) bf16
    x_bf16 = x.astype(jnp.bfloat16)

    # 2 batch elements per step when possible: fills the 256-row MXU on
    # v6e/v7x, halves per-step overhead, and grid=(B//2,) still gives one
    # step per TensorCore on v7x (B=4 -> grid=(2,)).
    bb = 2 if B % 2 == 0 else 1

    out = pl.pallas_call(
        head_kernel,
        out_shape=jax.ShapeDtypeStruct((B, T, HEAD_SIZE), jnp.float32),
        grid=(B // bb,),
        in_specs=[
            pl.BlockSpec((bb, T, C), lambda b: (b, 0, 0)),
            pl.BlockSpec((C, 3 * HS_PAD), lambda b: (0, 0)),   # replicated weights
        ],
        out_specs=pl.BlockSpec((bb, T, HEAD_SIZE), lambda b: (b, 0, 0)),
        compiler_params=pltpu.CompilerParams(
            dimension_semantics=("parallel",)),        # batch shards across v7x cores
    )(x_bf16, wqkv)

    return out


# --------------------------- pure-JAX reference ---------------------------
def head_forward_ref(x, wq, wk, wv):
    B, T, C = x.shape
    q = x @ wq
    k = x @ wk
    v = x @ wv
    wei = jnp.einsum('btk,bsk->bts', q, k) * SCALE
    mask = jnp.tril(jnp.ones((T, T), bool))
    wei = jnp.where(mask, wei, -jnp.inf)
    wei = jax.nn.softmax(wei, axis=-1)
    return jnp.einsum('bts,bsk->btk', wei, v)


# ----------------------------------- main -----------------------------------
if __name__ == "__main__":
    key = jax.random.PRNGKey(0)
    kx, kq, kk, kv = jax.random.split(key, 4)

    B, T = 4, BLOCK_SIZE                               # (4, 128, 256) activations
    x = jax.random.normal(kx, (B, T, N_EMBD), jnp.float32)
    wq = 0.02 * jax.random.normal(kq, (N_EMBD, HEAD_SIZE), jnp.float32)
    wk = 0.02 * jax.random.normal(kk, (N_EMBD, HEAD_SIZE), jnp.float32)
    wv = 0.02 * jax.random.normal(kv, (N_EMBD, HEAD_SIZE), jnp.float32)

    out = jax.jit(head_forward)(x, wq, wk, wv)
    out = jax.block_until_ready(out)

    assert out.shape == (B, T, HEAD_SIZE), out.shape
    assert bool(jnp.all(jnp.isfinite(out)))

    ref = head_forward_ref(x, wq, wk, wv)
    max_err = float(jnp.max(jnp.abs(out - ref)))
    # bf16 MXU operands (f32 accumulation) -> slightly looser tolerance.
    assert bool(jnp.allclose(out, ref, atol=2e-2, rtol=2e-2)), max_err

    print("KERNEL_OK")
</pallas_src>

<mosaic_0001>
module attributes {stable_mosaic.version = 11 : i64} {
  func.func @head_kernel(%arg0: i32, %arg1: memref<2x128x256xbf16, #tpu.memory_space<vmem>>, %arg2: memref<256x384xbf16, #tpu.memory_space<vmem>>, %arg3: memref<2x128x64xf32, #tpu.memory_space<vmem>>) attributes {dimension_semantics = [#tpu.dimension_semantics<parallel>], iteration_bounds = array<i64: 2>, scalar_prefetch = 0 : i64, scratch_operands = 0 : i64, tpu.core_type = #tpu.core_type<tc>, window_params = [{transform_indices = @transform_0, window_bounds = array<i64: 2, 128, 256>}, {pipeline_mode = #tpu.pipeline_mode<synchronous>, transform_indices = @transform_1, window_bounds = array<i64: 256, 384>}, {transform_indices = @transform_2, window_bounds = array<i64: 2, 128, 64>}]} {
    %c0 = arith.constant 0 : index
    %c0_0 = arith.constant 0 : index
    %c0_1 = arith.constant 0 : index
    %0 = vector.load %arg1[%c0, %c0_0, %c0_1] : memref<2x128x256xbf16, #tpu.memory_space<vmem>>, vector<2x128x256xbf16>
    %1 = vector.shape_cast %0 : vector<2x128x256xbf16> to vector<256x256xbf16>
    %c0_2 = arith.constant 0 : index
    %c0_3 = arith.constant 0 : index
    %2 = vector.load %arg2[%c0_2, %c0_3] : memref<256x384xbf16, #tpu.memory_space<vmem>>, vector<256x384xbf16>
    %cst = arith.constant dense<0.000000e+00> : vector<256x384xf32>
    %3 = tpu.matmul %1, %2, %cst {dimension_numbers = #tpu.dot_dimension_numbers<[1], [0], [0], [1], [0, 0, 1, 1], [], []>} : vector<256x256xbf16>, vector<256x384xbf16>, vector<256x384xf32> -> vector<256x384xf32>
    %4 = arith.truncf %3 : vector<256x384xf32> to vector<256x384xbf16>
    %5 = vector.shape_cast %4 : vector<256x384xbf16> to vector<2x128x384xbf16>
    %6 = tpu.iota {dimensions = array<i32: 0>} : vector<128x128xi32>
    %7 = tpu.iota {dimensions = array<i32: 1>} : vector<128x128xi32>
    %8 = arith.cmpi sge, %6, %7 : vector<128x128xi32>
    %9 = vector.extract_strided_slice %5 {offsets = [0, 0, 0], sizes = [1, 128, 128], strides = [1, 1, 1]} : vector<2x128x384xbf16> to vector<1x128x128xbf16>
    %10 = vector.shape_cast %9 : vector<1x128x128xbf16> to vector<128x128xbf16>
    %11 = vector.extract_strided_slice %5 {offsets = [0, 0, 128], sizes = [1, 128, 128], strides = [1, 1, 1]} : vector<2x128x384xbf16> to vector<1x128x128xbf16>
    %12 = vector.shape_cast %11 : vector<1x128x128xbf16> to vector<128x128xbf16>
    %13 = vector.extract_strided_slice %5 {offsets = [0, 0, 256], sizes = [1, 128, 64], strides = [1, 1, 1]} : vector<2x128x384xbf16> to vector<1x128x64xbf16>
    %14 = vector.shape_cast %13 : vector<1x128x64xbf16> to vector<128x64xbf16>
    %cst_4 = arith.constant dense<0.000000e+00> : vector<128x128xf32>
    %15 = tpu.matmul %10, %12, %cst_4 {dimension_numbers = #tpu.dot_dimension_numbers<[1], [1], [0], [0], [0, 0, 1, 0], [], []>} : vector<128x128xbf16>, vector<128x128xbf16>, vector<128x128xf32> -> vector<128x128xf32>
    %cst_5 = arith.constant -1.000000e+30 : f32
    %16 = vector.broadcast %cst_5 : f32 to vector<128x128xf32>
    %17 = arith.select %8, %15, %16 : vector<128x128xi1>, vector<128x128xf32>
    %cst_6 = arith.constant dense<0xFF800000> : vector<128xf32>
    %18 = vector.multi_reduction <maximumf>, %17, %cst_6 [1] : vector<128x128xf32> to vector<128xf32>
    %19 = vector.shape_cast %18 : vector<128xf32> to vector<128x1xf32>
    %20 = vector.broadcast %19 : vector<128x1xf32> to vector<128x128xf32>
    %21 = arith.subf %17, %20 : vector<128x128xf32>
    %22 = math.exp %21 : vector<128x128xf32>
    %cst_7 = arith.constant dense<0.000000e+00> : vector<128xf32>
    %23 = vector.multi_reduction <add>, %22, %cst_7 [1] : vector<128x128xf32> to vector<128xf32>
    %24 = vector.shape_cast %23 : vector<128xf32> to vector<128x1xf32>
    %25 = tpu.reciprocal %24 {approx = true} : vector<128x1xf32> -> vector<128x1xf32>
    %26 = vector.broadcast %25 : vector<128x1xf32> to vector<128x128xf32>
    %27 = arith.mulf %22, %26 : vector<128x128xf32>
    %28 = arith.truncf %27 : vector<128x128xf32> to vector<128x128xbf16>
    %cst_8 = arith.constant dense<0.000000e+00> : vector<128x64xf32>
    %29 = tpu.matmul %28, %14, %cst_8 {dimension_numbers = #tpu.dot_dimension_numbers<[1], [0], [0], [1], [0, 0, 1, 1], [], []>} : vector<128x128xbf16>, vector<128x64xbf16>, vector<128x64xf32> -> vector<128x64xf32>
    %c0_9 = arith.constant 0 : index
    %c0_10 = arith.constant 0 : index
    %c0_11 = arith.constant 0 : index
    %30 = vector.load %arg3[%c0_9, %c0_10, %c0_11] : memref<2x128x64xf32, #tpu.memory_space<vmem>>, vector<1x128x64xf32>
    %31 = vector.shape_cast %30 : vector<1x128x64xf32> to vector<128x64xf32>
    %32 = vector.shape_cast %29 : vector<128x64xf32> to vector<1x128x64xf32>
    tpu.vector_store %arg3[%c0_9, %c0_10, %c0_11], %32 {strides = array<i32>} : memref<2x128x64xf32, #tpu.memory_space<vmem>>, vector<1x128x64xf32>,
    %33 = vector.extract_strided_slice %5 {offsets = [1, 0, 0], sizes = [1, 128, 128], strides = [1, 1, 1]} : vector<2x128x384xbf16> to vector<1x128x128xbf16>
    %34 = vector.shape_cast %33 : vector<1x128x128xbf16> to vector<128x128xbf16>
    %35 = vector.extract_strided_slice %5 {offsets = [1, 0, 128], sizes = [1, 128, 128], strides = [1, 1, 1]} : vector<2x128x384xbf16> to vector<1x128x128xbf16>
    %36 = vector.shape_cast %35 : vector<1x128x128xbf16> to vector<128x128xbf16>
    %37 = vector.extract_strided_slice %5 {offsets = [1, 0, 256], sizes = [1, 128, 64], strides = [1, 1, 1]} : vector<2x128x384xbf16> to vector<1x128x64xbf16>
    %38 = vector.shape_cast %37 : vector<1x128x64xbf16> to vector<128x64xbf16>
    %cst_12 = arith.constant dense<0.000000e+00> : vector<128x128xf32>
    %39 = tpu.matmul %34, %36, %cst_12 {dimension_numbers = #tpu.dot_dimension_numbers<[1], [1], [0], [0], [0, 0, 1, 0], [], []>} : vector<128x128xbf16>, vector<128x128xbf16>, vector<128x128xf32> -> vector<128x128xf32>
    %cst_13 = arith.constant -1.000000e+30 : f32
    %40 = vector.broadcast %cst_13 : f32 to vector<128x128xf32>
    %41 = arith.select %8, %39, %40 : vector<128x128xi1>, vector<128x128xf32>
    %cst_14 = arith.constant dense<0xFF800000> : vector<128xf32>
    %42 = vector.multi_reduction <maximumf>, %41, %cst_14 [1] : vector<128x128xf32> to vector<128xf32>
    %43 = vector.shape_cast %42 : vector<128xf32> to vector<128x1xf32>
    %44 = vector.broadcast %43 : vector<128x1xf32> to vector<128x128xf32>
    %45 = arith.subf %41, %44 : vector<128x128xf32>
    %46 = math.exp %45 : vector<128x128xf32>
    %cst_15 = arith.constant dense<0.000000e+00> : vector<128xf32>
    %47 = vector.multi_reduction <add>, %46, %cst_15 [1] : vector<128x128xf32> to vector<128xf32>
    %48 = vector.shape_cast %47 : vector<128xf32> to vector<128x1xf32>
    %49 = tpu.reciprocal %48 {approx = true} : vector<128x1xf32> -> vector<128x1xf32>
    %50 = vector.broadcast %49 : vector<128x1xf32> to vector<128x128xf32>
    %51 = arith.mulf %46, %50 : vector<128x128xf32>
    %52 = arith.truncf %51 : vector<128x128xf32> to vector<128x128xbf16>
    %cst_16 = arith.constant dense<0.000000e+00> : vector<128x64xf32>
    %53 = tpu.matmul %52, %38, %cst_16 {dimension_numbers = #tpu.dot_dimension_numbers<[1], [0], [0], [1], [0, 0, 1, 1], [], []>} : vector<128x128xbf16>, vector<128x64xbf16>, vector<128x64xf32> -> vector<128x64xf32>
    %c1 = arith.constant 1 : index
    %c0_17 = arith.constant 0 : index
    %c0_18 = arith.constant 0 : index
    %54 = vector.load %arg3[%c1, %c0_17, %c0_18] : memref<2x128x64xf32, #tpu.memory_space<vmem>>, vector<1x128x64xf32>
    %55 = vector.shape_cast %54 : vector<1x128x64xf32> to vector<128x64xf32>
    %56 = vector.shape_cast %53 : vector<128x64xf32> to vector<1x128x64xf32>
    tpu.vector_store %arg3[%c1, %c0_17, %c0_18], %56 {strides = array<i32>} : memref<2x128x64xf32, #tpu.memory_space<vmem>>, vector<1x128x64xf32>,
    return
  }
  func.func @transform_0(%arg0: i32) -> (i32, i32, i32) {
    %c0_i32 = arith.constant 0 : i32
    %c0_i32_0 = arith.constant 0 : i32
    %c0_i32_1 = arith.constant 0 : i32
    return %arg0, %c0_i32, %c0_i32_0 : i32, i32, i32
  }
  func.func @transform_1(%arg0: i32) -> (i32, i32) {
    %c0_i32 = arith.constant 0 : i32
    %c0_i32_0 = arith.constant 0 : i32
    %c0_i32_1 = arith.constant 0 : i32
    return %c0_i32, %c0_i32_0 : i32, i32
  }
  func.func @transform_2(%arg0: i32) -> (i32, i32, i32) {
    %c0_i32 = arith.constant 0 : i32
    %c0_i32_0 = arith.constant 0 : i32
    %c0_i32_1 = arith.constant 0 : i32
    return %arg0, %c0_i32, %c0_i32_0 : i32, i32, i32
  }
}

</mosaic_0001>

<bundles_post_ra>
// kernel: head_forward.1
= control target key start
LH: loop header
LB: loop body
LE: loop exit
PB: predicated region body
PF: predicated region fallthrough
CT: control target
= control target key end

     0   :  { %s2604_s9 = smov 0   ;;  %s3429_s0 = inlined_call_operand.vmem [shape: bf16[4,128,256], index: 0, kind: input, shape index: {}]   ;;  %s3430_s1 = inlined_call_operand.vmem [shape: bf16[256,384], index: 1, kind: input, shape index: {}]   ;;  %s3431_s2 = inlined_call_operand.vmem [shape: f32[4,128,64], index: 2, kind: output, shape index: {}]  }
   0x1 LB: > { %s1918_s10 = sadd.s32 4294967295, %s2587_s9   ;;  %p1922_p0 = scmp.ge.s32.totalorder %s2587_s9, 1  ;;  %s2587_s9 = sphi %s2604_s9, %s12_s9  }
   0x2   : > { %p114_p1 = scmp.lt.s32.totalorder %s2587_s9, 3 }
   0x4   : > { %p115_p2 = pnand %p1922_p0, %p114_p1 }
   0x5   : > { %v2341_v0 = vld [vmem:[%s3430_s1 + $0x4] ss:$12 sps:$4 sm:$0xff] (!%p115_p2)   ;;  %v2343_v1 = vld [vmem:[%s3430_s1] ss:$12 sps:$4 sm:$0xff] (!%p115_p2)   ;;  %v2344_v2 = vld [vmem:[%s3430_s1 + $0x1c] ss:$12 sps:$4 sm:$0xff] (!%p115_p2)  }
   0x6   : > { %118 = sbr.rel (%p115_p2) target bundleno = 1189 (0x4a5), region = 28  ;;  %665 = vmatprep.subr.bf16.mxu0 (!%p115_p2), %v2341_v0  ;;  %v2346_v3 = vld [vmem:[%s3430_s1 + $0x18] ss:$12 sps:$4 sm:$0xff] (!%p115_p2)   ;;  %v2347_v4 = vld [vmem:[%s3430_s1 + $0x34] ss:$12 sps:$4 sm:$0xff] (!%p115_p2)   ;;  %s1923_s21 = sshll.u32 (!%p115_p2), %s1918_s10, 1 }
   0x7   : > { %666 = vmatpush1.bf16.msra.mxu0 (!%p115_p2), %v2343_v1  ;;  %v2349_v5 = vld [vmem:[%s3430_s1 + $0x30] ss:$12 sps:$4 sm:$0xff] (!%p115_p2)   ;;  %v2350_v6 = vld [vmem:[%s3430_s1 + $0x4c] ss:$12 sps:$4 sm:$0xff] (!%p115_p2)   ;;  %p139_p3 = scmp.lt.s32.totalorder (!%p115_p2), %s1923_s21, 3 }
   0x8   : > { %667 = vmatprep.subr.bf16.mxu0 (!%p115_p2), %v2344_v2  ;;  %v2352_v7 = vld [vmem:[%s3430_s1 + $0x48] ss:$12 sps:$4 sm:$0xff] (!%p115_p2)   ;;  %v2353_v8 = vld [vmem:[%s3430_s1 + $0x64] ss:$12 sps:$4 sm:$0xff] (!%p115_p2)   ;;  %v2355_v9 = vld [vmem:[%s3430_s1 + $0x60] ss:$12 sps:$4 sm:$0xff] (!%p115_p2)  }
   0x9   : > { %v2356_v10 = vld [vmem:[%s3430_s1 + $0x7c] ss:$12 sps:$4 sm:$0xff] (!%p115_p2)   ;;  %v2358_v11 = vld [vmem:[%s3430_s1 + $0x78] ss:$12 sps:$4 sm:$0xff] (!%p115_p2)   ;;  %v2359_v12 = vld [vmem:[%s3430_s1 + $0x94] ss:$12 sps:$4 sm:$0xff] (!%p115_p2)  }
   0xa   : > { %v2361_v14 = vld [vmem:[%s3430_s1 + $0x90] ss:$12 sps:$4 sm:$0xff] (!%p115_p2)   ;;  %v2362_v15 = vld [vmem:[%s3430_s1 + $0xac] ss:$12 sps:$4 sm:$0xff] (!%p115_p2)   ;;  %v2364_v16 = vld [vmem:[%s3430_s1 + $0xa8] ss:$12 sps:$4 sm:$0xff] (!%p115_p2)  }
   0xb   : > { %668 = vmatpush1.bf16.msra.mxu0 (!%p115_p2), %v2346_v3  ;;  %v2365_v17 = vld [vmem:[%s3430_s1 + $0xc4] ss:$12 sps:$4 sm:$0xff] (!%p115_p2)   ;;  %v2367_v18 = vld [vmem:[%s3430_s1 + $0xc0] ss:$12 sps:$4 sm:$0xff] (!%p115_p2)   ;;  %v2368_v19 = vld [vmem:[%s3430_s1 + $0xdc] ss:$12 sps:$4 sm:$0xff] (!%p115_p2)  }
   0xc   : > { %669 = vmatprep.subr.bf16.mxu0 (!%p115_p2), %v2347_v4  ;;  %v2370_v20 = vld [vmem:[%s3430_s1 + $0xd8] ss:$12 sps:$4 sm:$0xff] (!%p115_p2)   ;;  %v2415_v21 = vld [vmem:[%s3430_s1 + $0xc8] ss:$12 sps:$4 sm:$0xff] (!%p115_p2)   ;;  %v2418_v24 = vld [vmem:[%s3430_s1 + $0xe0] ss:$12 sps:$4 sm:$0xff] (!%p115_p2)  }
   0xd   : > { %s3433_s21 = smov (!%p139_p3, %s1923_s21), 3  ;;  %v2371_v22 = vld [vmem:[%s3430_s1 + $0xf4] ss:$12 sps:$4 sm:$0xff]   ;;  %2029 = vmatprep.subr.bf16.mxu1 %v2415_v21  ;;  %v2373_v26 = vld [vmem:[%s3430_s1 + $0xf0] ss:$12 sps:$4 sm:$0xff]  }
   0xe   : > { %s2027_s6 = sshll.u32 %s3433_s21, 7  ;;  %v2417_v23 = vld [vmem:[%s3430_s1 + $0x8] ss:$12 sps:$4 sm:$0xff]   ;;  %v2419_v25 = vld [vmem:[%s3430_s1 + $0x20] ss:$12 sps:$4 sm:$0xff]  }
   0xf   : > { %670 = vmatpush1.bf16.msra.mxu0 %v2349_v5  ;;  %s2656_s12 = scalar_lea.vmem %s3429_s0, %s2027_s6  ;;  %2030 = vmatpush3.bf16.msra.mxu1 %v2417_v23  ;;  %v2422_v27 = vld [vmem:[%s3430_s1 + $0xf8] ss:$12 sps:$4 sm:$0xff]   ;;  %v2425_v30 = vld [vmem:[%s3430_s1 + $0x110] ss:$12 sps:$4 sm:$0xff]   ;;  %v2376_v31 = vld [vmem:[%s3430_s1 + $0x108] ss:$12 sps:$4 sm:$0xff]   ;;  %s3360_s14 = scalar_lea.vmem %s3431_s2, %s2027_s6 }
  0x10   : > { %671 = vmatprep.subr.bf16.mxu0 %v2350_v6  ;;  %v2391_v13 = vld [vmem:[%s2656_s12 + $0x4] ss:$8 sps:$4 sm:$0xff]   ;;  %2031 = vmatprep.subr.bf16.mxu1 %v2418_v24  ;;  %v2426_v33 = vld [vmem:[%s3430_s1 + $0x50] ss:$12 sps:$4 sm:$0xff]   ;;  %v2429_v34 = vld [vmem:[%s3430_s1 + $0x128] ss:$12 sps:$4 sm:$0xff]  }
  0x11   : > { %697 = vmatprep.mubr.bf16.mxu0 %v2391_v13  ;;  %890 = vmatprep.mubr.bf16.mxu1 %v2391_v13  ;;  %v2374_v28 = vld [vmem:[%s3430_s1 + $0x10c] ss:$12 sps:$4 sm:$0xff]   ;;  %v2377_v32 = vld [vmem:[%s3430_s1 + $0x124] ss:$12 sps:$4 sm:$0xff]   ;;  %v2380_v36 = vld [vmem:[%s3430_s1 + $0x13c] ss:$12 sps:$4 sm:$0xff]  }
  0x12   : > { %v2424_v29 = vld [vmem:[%s3430_s1 + $0x38] ss:$12 sps:$4 sm:$0xff]   ;;  %v2379_v35 = vld [vmem:[%s3430_s1 + $0x120] ss:$12 sps:$4 sm:$0xff]   ;;  %v2431_v37 = vld [vmem:[%s3430_s1 + $0x68] ss:$12 sps:$4 sm:$0xff]  }
  0x13   : > { %672 = vmatpush1.bf16.msra.mxu0 %v2352_v7  ;;  %2032 = vmatpush3.bf16.msra.mxu1 %v2419_v25  ;;  %v2432_v38 = vld [vmem:[%s3430_s1 + $0x140] ss:$12 sps:$4 sm:$0xff]   ;;  %v2382_v39 = vld [vmem:[%s3430_s1 + $0x138] ss:$12 sps:$4 sm:$0xff]   ;;  %v2385_v43 = vld [vmem:[%s3430_s1 + $0x150] ss:$12 sps:$4 sm:$0xff]  }
  0x14   : > { %673 = vmatprep.subr.bf16.mxu0 %v2353_v8  ;;  %2033 = vmatprep.subr.bf16.mxu1 %v2422_v27  ;;  %v2383_v40 = vld [vmem:[%s3430_s1 + $0x154] ss:$12 sps:$4 sm:$0xff]   ;;  %v2436_v42 = vld [vmem:[%s3430_s1 + $0x158] ss:$12 sps:$4 sm:$0xff]   ;;  %v2439_v46 = vld [vmem:[%s3430_s1 + $0x170] ss:$12 sps:$4 sm:$0xff]  }
  0x15   : > { %v2433_v41 = vld [vmem:[%s3430_s1 + $0x80] ss:$12 sps:$4 sm:$0xff]   ;;  %v2438_v45 = vld [vmem:[%s3430_s1 + $0x98] ss:$12 sps:$4 sm:$0xff]   ;;  %v2388_v47 = vld [vmem:[%s3430_s1 + $0x168] ss:$12 sps:$4 sm:$0xff]  }
  0x16   : > { %v2386_v44 = vld [vmem:[%s3430_s1 + $0x16c] ss:$12 sps:$4 sm:$0xff]   ;;  %v2440_v48 = vld [vmem:[%s3430_s1 + $0xb0] ss:$12 sps:$4 sm:$0xff]   ;;  %v2389_v49 = vld [vmem:[%s2656_s12] ss:$8 sps:$4 sm:$0xff]  }
  0x17   : > { %674 = vmatpush1.bf16.msra.mxu0 %v2355_v9  ;;  %2034 = vmatpush3.bf16.msra.mxu1 %v2424_v29  ;;  %v2392_v50 = vld [vmem:[%s2656_s12 + $0x14] ss:$8 sps:$4 sm:$0xff]   ;;  %v2394_v51 = vld [vmem:[%s2656_s12 + $0x10] ss:$8 sps:$4 sm:$0xff]   ;;  %v2395_v52 = vld [vmem:[%s2656_s12 + $0x24] ss:$8 sps:$4 sm:$0xff]  }
  0x18   : > { %675 = vmatprep.subr.bf16.mxu0 %v2356_v10  ;;  %2035 = vmatprep.subr.bf16.mxu1 %v2425_v30  ;;  %v2397_v53 = vld [vmem:[%s2656_s12 + $0x20] ss:$8 sps:$4 sm:$0xff]   ;;  %v2398_v54 = vld [vmem:[%s2656_s12 + $0x34] ss:$8 sps:$4 sm:$0xff]   ;;  %v2400_v55 = vld [vmem:[%s2656_s12 + $0x30] ss:$8 sps:$4 sm:$0xff]  }
  0x19   : > { %v2401_v56 = vld [vmem:[%s2656_s12 + $0x44] ss:$8 sps:$4 sm:$0xff]   ;;  %v2403_v57 = vld [vmem:[%s2656_s12 + $0x40] ss:$8 sps:$4 sm:$0xff]   ;;  %v2404_v58 = vld [vmem:[%s2656_s12 + $0x54] ss:$8 sps:$4 sm:$0xff]  }
  0x1a   : > { %v2406_v59 = vld [vmem:[%s2656_s12 + $0x50] ss:$8 sps:$4 sm:$0xff]   ;;  %v2407_v60 = vld [vmem:[%s2656_s12 + $0x64] ss:$8 sps:$4 sm:$0xff]   ;;  %v2409_v61 = vld [vmem:[%s2656_s12 + $0x60] ss:$8 sps:$4 sm:$0xff]  }
  0x1b   : > { %676 = vmatpush1.bf16.msra.mxu0 %v2358_v11  ;;  %2036 = vmatpush3.bf16.msra.mxu1 %v2426_v33  ;;  %v2410_v62 = vld [vmem:[%s2656_s12 + $0x74] ss:$8 sps:$4 sm:$0xff]   ;;  %v2412_v63 = vld [vmem:[%s2656_s12 + $0x70] ss:$8 sps:$4 sm:$0xff]   ;;  %v2413_v0 = vld [vmem:[%s2656_s12 + $0x84] ss:$8 sps:$4 sm:$0xff]  }
  0x1c   : > { %677 = vmatprep.subr.bf16.mxu0 %v2359_v12  ;;  %2037 = vmatprep.subr.bf16.mxu1 %v2429_v34  ;;  %v2416_v1 = vld [vmem:[%s2656_s12 + $0x80] ss:$8 sps:$4 sm:$0xff]   ;;  %v2420_v2 = vld [vmem:[%s2656_s12 + $0x94] ss:$8 sps:$4 sm:$0xff]   ;;  %v2423_v3 = vld [vmem:[%s2656_s12 + $0x90] ss:$8 sps:$4 sm:$0xff]  }
  0x1d   : > { %v2427_v4 = vld [vmem:[%s2656_s12 + $0xa4] ss:$8 sps:$4 sm:$0xff]   ;;  %v2430_v5 = vld [vmem:[%s2656_s12 + $0xa0] ss:$8 sps:$4 sm:$0xff]   ;;  %v2434_v6 = vld [vmem:[%s2656_s12 + $0xb4] ss:$8 sps:$4 sm:$0xff]  }
  0x1e   : > { %v2437_v7 = vld [vmem:[%s2656_s12 + $0xb0] ss:$8 sps:$4 sm:$0xff]   ;;  %v2441_v8 = vld [vmem:[%s2656_s12 + $0xc4] ss:$8 sps:$4 sm:$0xff]   ;;  %v2443_v9 = vld [vmem:[%s2656_s12 + $0xc0] ss:$8 sps:$4 sm:$0xff]  }
  0x1f   : > { %678 = vmatpush1.bf16.msra.mxu0 %v2361_v14  ;;  %2038 = vmatpush3.bf16.msra.mxu1 %v2431_v37  ;;  %v2444_v10 = vld [vmem:[%s2656_s12 + $0xd4] ss:$8 sps:$4 sm:$0xff]   ;;  %v2446_v11 = vld [vmem:[%s2656_s12 + $0xd0] ss:$8 sps:$4 sm:$0xff]   ;;  %v2447_v12 = vld [vmem:[%s2656_s12 + $0xe4] ss:$8 sps:$4 sm:$0xff]  }
  0x20   : > { %679 = vmatprep.subr.bf16.mxu0 %v2362_v15  ;;  %2039 = vmatprep.subr.bf16.mxu1 %v2432_v38  ;;  %v2449_v13 = vld [vmem:[%s2656_s12 + $0xe0] ss:$8 sps:$4 sm:$0xff]   ;;  %v2450_v14 = vld [vmem:[%s2656_s12 + $0xf4] ss:$8 sps:$4 sm:$0xff]   ;;  %v2452_v15 = vld [vmem:[%s2656_s12 + $0xf0] ss:$8 sps:$4 sm:$0xff]  }
  0x23   : > { %680 = vmatpush1.bf16.msra.mxu0 %v2364_v16  ;;  %2040 = vmatpush3.bf16.msra.mxu1 %v2433_v41 }
  0x24   : > { %681 = vmatprep.subr.bf16.mxu0 %v2365_v17  ;;  %2041 = vmatprep.subr.bf16.mxu1 %v2436_v42 }
  0x27   : > { %682 = vmatpush1.bf16.msra.mxu0 %v2367_v18  ;;  %2042 = vmatpush3.bf16.msra.mxu1 %v2438_v45 }
  0x28   : > { %683 = vmatprep.subr.bf16.mxu0 %v2368_v19  ;;  %2043 = vmatprep.subr.bf16.mxu1 %v2439_v46 }
  0x2b   : > { %684 = vmatpush1.bf16.msra.mxu0 %v2370_v20  ;;  %2044 = vmatpush3.bf16.msra.mxu1 %v2440_v48 }
  0x2c   : > { %685 = vmatprep.subr.bf16.mxu0 %v2371_v22 }
  0x2e   : > { %891 = vmatmul.mubr.bf16.vlgmr.msra.gmra.mrb[0].mxu1 %v2389_v49 }
  0x2f   : > { %686 = vmatpush1.bf16.msra.mxu0 %v2373_v26  ;;  %898 = vmatprep.mubr.bf16.mxu1 %v2392_v50 }
  0x30   : > { %687 = vmatprep.subr.bf16.mxu0 %v2374_v28 }
  0x33   : > { %688 = vmatpush1.bf16.msra.mxu0 %v2376_v31 }
  0x34   : > { %689 = vmatprep.subr.bf16.mxu0 %v2377_v32 }
  0x36   : > { %899 = vmatmul.mubr.bf16.gmra.mrb[4].mxu1 %v2394_v51 }
  0x37   : > { %690 = vmatpush1.bf16.msra.mxu0 %v2379_v35  ;;  %906 = vmatprep.mubr.bf16.mxu1 %v2395_v52 }
  0x38   : > { %691 = vmatprep.subr.bf16.mxu0 %v2380_v36 }
  0x3b   : > { %692 = vmatpush1.bf16.msra.mxu0 %v2382_v39 }
  0x3c   : > { %693 = vmatprep.subr.bf16.mxu0 %v2383_v40 }
  0x3e   : > { %907 = vmatmul.mubr.bf16.gmra.mrb[8].mxu1 %v2397_v53 }
  0x3f   : > { %694 = vmatpush1.bf16.msra.mxu0 %v2385_v43  ;;  %914 = vmatprep.mubr.bf16.mxu1 %v2398_v54 }
  0x40   : > { %695 = vmatprep.subr.bf16.mxu0 %v2386_v44 }
  0x43   : > { %696 = vmatpush1.bf16.msra.mxu0 %v2388_v47 }
  0x46   : > { %698 = vmatmul.mubr.bf16.vlgmr.msra.gmra.mrb[0].mxu0 %v2389_v49  ;;  %915 = vmatmul.mubr.bf16.gmra.mrb[12].mxu1 %v2400_v55 }
  0x47   : > { %707 = vmatprep.mubr.bf16.mxu0 %v2392_v50  ;;  %922 = vmatprep.mubr.bf16.mxu1 %v2401_v56 }
  0x4e   : > { %708 = vmatmul.mubr.bf16.gmra.mrb[4].mxu0 %v2394_v51  ;;  %923 = vmatmul.mubr.bf16.gmra.mrb[16].mxu1 %v2403_v57 }
  0x4f   : > { %717 = vmatprep.mubr.bf16.mxu0 %v2395_v52  ;;  %930 = vmatprep.mubr.bf16.mxu1 %v2404_v58 }
  0x56   : > { %718 = vmatmul.mubr.bf16.gmra.mrb[8].mxu0 %v2397_v53  ;;  %931 = vmatmul.mubr.bf16.gmra.mrb[20].mxu1 %v2406_v59 }
  0x57   : > { %727 = vmatprep.mubr.bf16.mxu0 %v2398_v54  ;;  %938 = vmatprep.mubr.bf16.mxu1 %v2407_v60 }
  0x5e   : > { %728 = vmatmul.mubr.bf16.gmra.mrb[12].mxu0 %v2400_v55  ;;  %939 = vmatmul.mubr.bf16.gmra.mrb[24].mxu1 %v2409_v61 }
  0x5f   : > { %737 = vmatprep.mubr.bf16.mxu0 %v2401_v56  ;;  %946 = vmatprep.mubr.bf16.mxu1 %v2410_v62 }
  0x66   : > { %738 = vmatmul.mubr.bf16.gmra.mrb[16].mxu0 %v2403_v57  ;;  %947 = vmatmul.mubr.bf16.gmra.mrb[28].mxu1 %v2412_v63 }
  0x67   : > { %747 = vmatprep.mubr.bf16.mxu0 %v2404_v58  ;;  %954 = vmatprep.mubr.bf16.mxu1 %v2413_v0 }
  0x6e   : > { %748 = vmatmul.mubr.bf16.gmra.mrb[20].mxu0 %v2406_v59  ;;  %955 = vmatmul.mubr.bf16.gmra.mrb[32].mxu1 %v2416_v1 }
  0x6f   : > { %757 = vmatprep.mubr.bf16.mxu0 %v2407_v60  ;;  %962 = vmatprep.mubr.bf16.mxu1 %v2420_v2 }
  0x76   : > { %758 = vmatmul.mubr.bf16.gmra.mrb[24].mxu0 %v2409_v61  ;;  %963 = vmatmul.mubr.bf16.gmra.mrb[36].mxu1 %v2423_v3 }
  0x77   : > { %767 = vmatprep.mubr.bf16.mxu0 %v2410_v62  ;;  %970 = vmatprep.mubr.bf16.mxu1 %v2427_v4 }
  0x7e   : > { %768 = vmatmul.mubr.bf16.gmra.mrb[28].mxu0 %v2412_v63  ;;  %971 = vmatmul.mubr.bf16.gmra.mrb[40].mxu1 %v2430_v5 }
  0x7f   : > { %777 = vmatprep.mubr.bf16.mxu0 %v2413_v0  ;;  %978 = vmatprep.mubr.bf16.mxu1 %v2434_v6 }
  0x86   : > { %778 = vmatmul.mubr.bf16.gmra.mrb[32].mxu0 %v2416_v1  ;;  %979 = vmatmul.mubr.bf16.gmra.mrb[44].mxu1 %v2437_v7 }
  0x87   : > { %787 = vmatprep.mubr.bf16.mxu0 %v2420_v2  ;;  %986 = vmatprep.mubr.bf16.mxu1 %v2441_v8 }
  0x8e   : > { %788 = vmatmul.mubr.bf16.gmra.mrb[36].mxu0 %v2423_v3  ;;  %987 = vmatmul.mubr.bf16.gmra.mrb[48].mxu1 %v2443_v9 }
  0x8f   : > { %797 = vmatprep.mubr.bf16.mxu0 %v2427_v4  ;;  %994 = vmatprep.mubr.bf16.mxu1 %v2444_v10 }
  0x96   : > { %798 = vmatmul.mubr.bf16.gmra.mrb[40].mxu0 %v2430_v5  ;;  %995 = vmatmul.mubr.bf16.gmra.mrb[52].mxu1 %v2446_v11 }
  0x97   : > { %807 = vmatprep.mubr.bf16.mxu0 %v2434_v6  ;;  %1002 = vmatprep.mubr.bf16.mxu1 %v2447_v12 }
  0x9e   : > { %808 = vmatmul.mubr.bf16.gmra.mrb[44].mxu0 %v2437_v7  ;;  %1003 = vmatmul.mubr.bf16.gmra.mrb[56].mxu1 %v2449_v13 }
  0x9f   : > { %817 = vmatprep.mubr.bf16.mxu0 %v2441_v8  ;;  %1010 = vmatprep.mubr.bf16.mxu1 %v2450_v14 }
  0xa6   : > { %818 = vmatmul.mubr.bf16.gmra.mrb[48].mxu0 %v2443_v9  ;;  %1011 = vmatmul.mubr.bf16.gmra.mrb[60].mxu1 %v2452_v15 }
  0xa7   : > { %827 = vmatprep.mubr.bf16.mxu0 %v2444_v10 }
  0xae   : > { %828 = vmatmul.mubr.bf16.gmra.mrb[52].mxu0 %v2446_v11 }
  0xaf   : > { %837 = vmatprep.mubr.bf16.mxu0 %v2447_v12 }
  0xb6   : > { %838 = vmatmul.mubr.bf16.gmra.mrb[56].mxu0 %v2449_v13 }
  0xb7   : > { %847 = vmatprep.mubr.bf16.mxu0 %v2450_v14 }
  0xbe   : > { %848 = vmatmul.mubr.bf16.gmra.mrb[60].mxu0 %v2452_v15 }
 0x101   : > { %v2045_v34 = vpop.f32.mrb[0].mxu1 }
 0x102   : > { %v2046_v35 = vpop.f32.mrb[1].mxu1 }
 0x103   : > { %v2048_v37 = vpop.f32.mrb[2].mxu1  ;;  %v2047_v41 = vadd.f32 %v2046_v35, %v2045_v34 }
 0x104   : > { %v2049_v39 = vpop.f32.mrb[3].mxu1 }
 0x105   : > { %v2050_v42 = vadd.f32 %v2049_v39, %v2048_v37 }
 0x107   : > { %v1021_v46 = vpack.c.bf16 %v2050_v42, %v2047_v41 }
 0x109   : > { %v2051_v47 = vpop.f32.mrb[4].mxu1  ;;  %2237 = vmatprep.subr.bf16.mxu0 %v1021_v46 }
 0x10a   : > { %v2052_v48 = vpop.f32.mrb[5].mxu1  ;;  %2238 = vmatpush3.bf16.msra.mxu0 %v1021_v46 }
 0x10b   : > { %v2053_v50 = vadd.f32 %v2052_v48, %v2051_v47  ;;  %v2054_v51 = vpop.f32.mrb[6].mxu1 }
 0x10c   : > { %v2055_v53 = vpop.f32.mrb[7].mxu1 }
 0x10d   : > { %v2056_v55 = vadd.f32 %v2055_v53, %v2054_v51 }
 0x10f   : > { %v1024_v61 = vpack.c.bf16 %v2056_v55, %v2053_v50 }
 0x111   : > { %v2057_v56 = vpop.f32.mrb[8].mxu1  ;;  %2239 = vmatprep.subr.bf16.mxu0 %v1024_v61 }
 0x112   : > { %v2058_v59 = vpop.f32.mrb[9].mxu1  ;;  %2240 = vmatpush3.bf16.msra.mxu0 %v1024_v61 }
 0x113   : > { %v2059_v62 = vadd.f32 %v2058_v59, %v2057_v56  ;;  %v2060_v63 = vpop.f32.mrb[10].mxu1 }
 0x114   : > { %v2061_v0 = vpop.f32.mrb[11].mxu1 }
 0x115   : > { %v2062_v1 = vadd.f32 %v2061_v0, %v2060_v63 }
 0x117   : > { %v1027_v5 = vpack.c.bf16 %v2062_v1, %v2059_v62 }
 0x119   : > { %v699_v16 = vpop.f32.mrb[0].mxu0  ;;  %v2063_v2 = vpop.f32.mrb[12].mxu1  ;;  %2241 = vmatprep.subr.bf16.mxu0 %v1027_v5 }
 0x11a   : > { %v701_v17 = vpop.f32.mrb[1].mxu0  ;;  %v2064_v3 = vpop.f32.mrb[13].mxu1  ;;  %2242 = vmatpush3.bf16.msra.mxu0 %v1027_v5 }
 0x11b   : > { %v703_v18 = vpop.f32.mrb[2].mxu0  ;;  %v2065_v6 = vadd.f32 %v2064_v3, %v2063_v2  ;;  %v2066_v7 = vpop.f32.mrb[14].mxu1 }
 0x11c   : > { %v1019_v19 = vpack.c.bf16 %v703_v18, %v699_v16  ;;  %v705_v20 = vpop.f32.mrb[3].mxu0  ;;  %v2067_v9 = vpop.f32.mrb[15].mxu1 }
 0x11d   : > { %v1020_v21 = vpack.c.bf16 %v705_v20, %v701_v17  ;;  %v2068_v11 = vadd.f32 %v2067_v9, %v2066_v7 }
 0x11e   : > { %2221 = vmatprep.mubr.bf16.mxu1 %v1019_v19 }
 0x11f   : > { %2205 = vmatprep.subr.bf16.mxu1 %v1020_v21  ;;  %v1030_v17 = vpack.c.bf16 %v2068_v11, %v2065_v6 }
 0x120   : > { %2206 = vmatpush3.bf16.xpose.msra.mxu1 %v1020_v21 }
 0x121   : > { %v2798_v22 = vpop.f32.mrb[4].mxu0  ;;  %v2069_v12 = vpop.f32.mrb[16].mxu1  ;;  %2243 = vmatprep.subr.bf16.mxu0 %v1030_v17 }
 0x122   : > { %v711_v23 = vpop.f32.mrb[5].mxu0  ;;  %v2070_v15 = vpop.f32.mrb[17].mxu1  ;;  %2244 = vmatpush3.bf16.msra.mxu0 %v1030_v17 }
 0x123   : > { %v2800_v24 = vpop.f32.mrb[6].mxu0  ;;  %v2071_v18 = vadd.f32 %v2070_v15, %v2069_v12  ;;  %v2072_v19 = vpop.f32.mrb[18].mxu1 }
 0x124   : > { %v1022_v25 = vpack.c.bf16 %v2800_v24, %v2798_v22  ;;  %v715_v26 = vpop.f32.mrb[7].mxu0  ;;  %v2073_v20 = vpop.f32.mrb[19].mxu1 }
 0x125   : > { %v1023_v27 = vpack.c.bf16 %v715_v26, %v711_v23  ;;  %v2074_v21 = vadd.f32 %v2073_v20, %v2072_v19 }
 0x127   : > { %2207 = vmatprep.subr.bf16.mxu1 %v1023_v27 }
 0x128   : > { %2208 = vmatpush3.bf16.xpose.msra.mxu1 %v1023_v27 }
 0x129   : > { %v2804_v28 = vpop.f32.mrb[8].mxu0  ;;  %v2075_v23 = vpop.f32.mrb[20].mxu1 }
 0x12a   : > { %v721_v29 = vpop.f32.mrb[9].mxu0  ;;  %v2076_v26 = vpop.f32.mrb[21].mxu1 }
 0x12b   : > { %v2806_v30 = vpop.f32.mrb[10].mxu0 }
 0x12c   : > { %v1025_v31 = vpack.c.bf16 %v2806_v30, %v2804_v28  ;;  %v725_v32 = vpop.f32.mrb[11].mxu0 }
 0x12d   : > { %v1026_v33 = vpack.c.bf16 %v725_v32, %v721_v29  ;;  %v1033_v29 = vpack.c.bf16 %v2074_v21, %v2071_v18  ;;  %v2077_v32 = vadd.f32 %v2076_v26, %v2075_v23 }
 0x12f   : > { %2209 = vmatprep.subr.bf16.mxu1 %v1026_v33  ;;  %2245 = vmatprep.subr.bf16.mxu0 %v1033_v29 }
 0x130   : > { %2210 = vmatpush3.bf16.xpose.msra.mxu1 %v1026_v33  ;;  %v2078_v33 = vpop.f32.mrb[22].mxu1  ;;  %2246 = vmatpush3.bf16.msra.mxu0 %v1033_v29 }
 0x131   : > { %v2810_v36 = vpop.f32.mrb[12].mxu0  ;;  %v2079_v35 = vpop.f32.mrb[23].mxu1 }
 0x132   : > { %v731_v38 = vpop.f32.mrb[13].mxu0  ;;  %v2081_v39 = vpop.f32.mrb[24].mxu1 }
 0x133   : > { %v2812_v40 = vpop.f32.mrb[14].mxu0 }
 0x134   : > { %v1028_v43 = vpack.c.bf16 %v2812_v40, %v2810_v36  ;;  %v735_v44 = vpop.f32.mrb[15].mxu0 }
 0x135   : > { %v1029_v45 = vpack.c.bf16 %v735_v44, %v731_v38  ;;  %v2080_v38 = vadd.f32 %v2079_v35, %v2078_v33  ;;  %v2082_v44 = vpop.f32.mrb[25].mxu1 }
 0x136   : > { %v2083_v47 = vadd.f32 %v2082_v44, %v2081_v39  ;;  %v2084_v48 = vpop.f32.mrb[26].mxu1 }
 0x137   : > { %2211 = vmatprep.subr.bf16.mxu1 %v1029_v45  ;;  %v1036_v46 = vpack.c.bf16 %v2080_v38, %v2077_v32  ;;  %v2085_v50 = vpop.f32.mrb[27].mxu1 }
 0x138   : > { %2212 = vmatpush3.bf16.xpose.msra.mxu1 %v1029_v45  ;;  %v2086_v51 = vadd.f32 %v2085_v50, %v2084_v48 }
 0x139   : > { %v2816_v49 = vpop.f32.mrb[16].mxu0  ;;  %2247 = vmatprep.subr.bf16.mxu0 %v1036_v46 }
 0x13a   : > { %v741_v52 = vpop.f32.mrb[17].mxu0  ;;  %2248 = vmatpush3.bf16.msra.mxu0 %v1036_v46  ;;  %v1039_v53 = vpack.c.bf16 %v2086_v51, %v2083_v47 }
 0x13b   : > { %v2818_v54 = vpop.f32.mrb[18].mxu0 }
 0x13c   : > { %v1031_v57 = vpack.c.bf16 %v2818_v54, %v2816_v49  ;;  %v745_v58 = vpop.f32.mrb[19].mxu0  ;;  %2249 = vmatprep.subr.bf16.mxu0 %v1039_v53 }
 0x13d   : > { %v1032_v60 = vpack.c.bf16 %v745_v58, %v741_v52  ;;  %v2087_v58 = vpop.f32.mrb[28].mxu1 }
 0x13e   : > { %v2088_v61 = vpop.f32.mrb[29].mxu1  ;;  %2250 = vmatpush3.bf16.msra.mxu0 %v1039_v53 }
 0x13f   : > { %2213 = vmatprep.subr.bf16.mxu1 %v1032_v60  ;;  %v2089_v63 = vadd.f32 %v2088_v61, %v2087_v58  ;;  %v2090_v0 = vpop.f32.mrb[30].mxu1 }
 0x140   : > { %2214 = vmatpush3.bf16.xpose.msra.mxu1 %v1032_v60  ;;  %v2091_v1 = vpop.f32.mrb[31].mxu1 }
 0x141   : > { %v2822_v4 = vpop.f32.mrb[20].mxu0  ;;  %v2092_v2 = vadd.f32 %v2091_v1, %v2090_v0 }
 0x142   : > { %v751_v8 = vpop.f32.mrb[21].mxu0 }
 0x143   : > { %v2824_v10 = vpop.f32.mrb[22].mxu0  ;;  %v1042_v5 = vpack.c.bf16 %v2092_v2, %v2089_v63 }
 0x144   : > { %v1034_v13 = vpack.c.bf16 %v2824_v10, %v2822_v4  ;;  %v755_v14 = vpop.f32.mrb[23].mxu0 }
 0x145   : > { %v1035_v16 = vpack.c.bf16 %v755_v14, %v751_v8  ;;  %v2093_v8 = vpop.f32.mrb[32].mxu1  ;;  %2251 = vmatprep.subr.bf16.mxu0 %v1042_v5 }
 0x146   : > { %v2094_v12 = vpop.f32.mrb[33].mxu1  ;;  %2252 = vmatpush3.bf16.msra.mxu0 %v1042_v5 }
 0x147   : > { %2215 = vmatprep.subr.bf16.mxu1 %v1035_v16  ;;  %v2095_v15 = vadd.f32 %v2094_v12, %v2093_v8 }
 0x148   : > { %2216 = vmatpush3.bf16.xpose.msra.mxu1 %v1035_v16  ;;  %v2096_v16 = vpop.f32.mrb[34].mxu1 }
 0x149   : > { %v2828_v27 = vpop.f32.mrb[24].mxu0  ;;  %v2097_v17 = vpop.f32.mrb[35].mxu1 }
 0x14a   : > { %v761_v34 = vpop.f32.mrb[25].mxu0  ;;  %v2098_v18 = vadd.f32 %v2097_v17, %v2096_v16  ;;  %v2099_v26 = vpop.f32.mrb[36].mxu1 }
 0x14b   : > { %v2830_v37 = vpop.f32.mrb[26].mxu0 }
 0x14c   : > { %v1037_v41 = vpack.c.bf16 %v2830_v37, %v2828_v27  ;;  %v765_v42 = vpop.f32.mrb[27].mxu0  ;;  %v2854_v20 = vpack.c.bf16 %v2098_v18, %v2095_v15 }
 0x14d   : > { %v1038_v45 = vpack.c.bf16 %v765_v42, %v761_v34 }
 0x14e   : > { %2301 = vmatprep.subr.bf16.mxu0 %v2854_v20 }
 0x14f   : > { %2217 = vmatprep.subr.bf16.mxu1 %v1038_v45 }
 0x150   : > { %2218 = vmatpush3.bf16.xpose.msra.mxu1 %v1038_v45 }
 0x151   : > { %v2834_v52 = vpop.f32.mrb[28].mxu0 }
 0x152   : > { %v771_v55 = vpop.f32.mrb[29].mxu0 }
 0x153   : > { %v2836_v56 = vpop.f32.mrb[30].mxu0 }
 0x154   : > { %v1040_v59 = vpack.c.bf16 %v2836_v56, %v2834_v52  ;;  %v775_v60 = vpop.f32.mrb[31].mxu0 }
 0x155   : > { %v1041_v62 = vpack.c.bf16 %v775_v60, %v771_v55 }
 0x157   : > { %2219 = vmatprep.subr.bf16.mxu1 %v1041_v62 }
 0x158   : > { %2220 = vmatpush3.bf16.xpose.msra.mxu1 %v1041_v62 }
 0x159   : > { %v2840_v3 = vpop.f32.mrb[32].mxu0 }
 0x15a   : > { %v781_v6 = vpop.f32.mrb[33].mxu0 }
 0x15b   : > { %v2842_v7 = vpop.f32.mrb[34].mxu0 }
 0x15c   : > { %v1043_v9 = vpack.c.bf16 %v2842_v7, %v2840_v3  ;;  %v785_v11 = vpop.f32.mrb[35].mxu0 }
 0x15d   : > { %v1044_v14 = vpack.c.bf16 %v785_v11, %v781_v6 }
 0x15f   : > { %2222 = vmatmul.mubr.bf16.vlgmr.msra.gmra.mrb[64].mxu1 %v1022_v25  ;;  %2269 = vmatprep.subr.bf16.mxu1 %v1044_v14  ;;  %v2100_v25 = vpop.f32.mrb[37].mxu1 }
 0x160   : > { %2225 = vmatprep.mubr.bf16.mxu1 %v1025_v31  ;;  %2270 = vmatpush3.bf16.xpose.msra.mxu1 %v1044_v14  ;;  %v2101_v32 = vadd.f32 %v2100_v25, %v2099_v26  ;;  %v2102_v28 = vpop.f32.mrb[38].mxu1 }
 0x161   : > { %v2852_v19 = vpop.f32.mrb[36].mxu0  ;;  %v2103_v30 = vpop.f32.mrb[39].mxu1 }
 0x162   : > { %v791_v21 = vpop.f32.mrb[37].mxu0  ;;  %v2104_v31 = vadd.f32 %v2103_v30, %v2102_v28  ;;  %v2105_v39 = vpop.f32.mrb[40].mxu1 }
 0x163   : > { %v2856_v23 = vpop.f32.mrb[38].mxu0  ;;  %v2106_v40 = vpop.f32.mrb[41].mxu1 }
 0x164   : > { %v1046_v22 = vpack.c.bf16 %v2856_v23, %v2852_v19  ;;  %v795_v24 = vpop.f32.mrb[39].mxu0  ;;  %v2869_v34 = vpack.c.bf16 %v2104_v31, %v2101_v32  ;;  %v2107_v44 = vadd.f32 %v2106_v40, %v2105_v39  ;;  %v2108_v45 = vpop.f32.mrb[42].mxu1 }
 0x165   : > { %v1047_v29 = vpack.c.bf16 %v795_v24, %v791_v21  ;;  %v2109_v46 = vpop.f32.mrb[43].mxu1 }
 0x166   : > { %v2110_v49 = vadd.f32 %v2109_v46, %v2108_v45  ;;  %v2111_v50 = vpop.f32.mrb[44].mxu1 }
 0x167   : > { %2226 = vmatmul.mubr.bf16.gmra.mrb[68].mxu1 %v1028_v43  ;;  %2271 = vmatprep.subr.bf16.mxu1 %v1047_v29  ;;  %v2112_v10 = vpop.f32.mrb[45].mxu1 }
 0x168   : > { %2229 = vmatprep.mubr.bf16.mxu1 %v1031_v57  ;;  %2272 = vmatpush3.bf16.xpose.msra.mxu1 %v1047_v29  ;;  %v2883_v57 = vpack.c.bf16 %v2110_v49, %v2107_v44  ;;  %v2113_v53 = vadd.f32 %v2112_v10, %v2111_v50  ;;  %v2114_v55 = vpop.f32.mrb[46].mxu1 }
 0x169   : > { %v2867_v33 = vpop.f32.mrb[40].mxu0  ;;  %v2115_v58 = vpop.f32.mrb[47].mxu1 }
 0x16a   : > { %v801_v35 = vpop.f32.mrb[41].mxu0  ;;  %v2116_v27 = vadd.f32 %v2115_v58, %v2114_v55  ;;  %v2117_v62 = vpop.f32.mrb[48].mxu1 }
 0x16b   : > { %v2871_v38 = vpop.f32.mrb[42].mxu0  ;;  %v2118_v1 = vpop.f32.mrb[49].mxu1 }
 0x16c   : > { %v1049_v42 = vpack.c.bf16 %v2871_v38, %v2867_v33  ;;  %v805_v36 = vpop.f32.mrb[43].mxu0  ;;  %v2119_v56 = vadd.f32 %v2118_v1, %v2117_v62 }
 0x16d   : > { %v1050_v43 = vpack.c.bf16 %v805_v36, %v801_v35 }
 0x16f   : > { %2230 = vmatmul.mubr.bf16.gmra.mrb[72].mxu1 %v1034_v13  ;;  %2273 = vmatprep.subr.bf16.mxu1 %v1050_v43 }
 0x170   : > { %2274 = vmatpush3.bf16.xpose.msra.mxu1 %v1050_v43  ;;  %2233 = vmatprep.mubr.bf16.mxu1 %v1037_v41  ;;  %v2897_v41 = vpack.c.bf16 %v2116_v27, %v2113_v53 }
 0x171   : > { %v2881_v54 = vpop.f32.mrb[44].mxu0 }
 0x172   : > { %v811_v47 = vpop.f32.mrb[45].mxu0 }
 0x173   : > { %v2885_v48 = vpop.f32.mrb[46].mxu0 }
 0x174   : > { %v1052_v51 = vpack.c.bf16 %v2885_v48, %v2881_v54  ;;  %v815_v4 = vpop.f32.mrb[47].mxu0 }
 0x175   : > { %v1053_v13 = vpack.c.bf16 %v815_v4, %v811_v47 }
 0x177   : > { %2234 = vmatmul.mubr.bf16.gmra.mrb[76].mxu1 %v1040_v59  ;;  %2275 = vmatprep.subr.bf16.mxu1 %v1053_v13  ;;  %v2120_v59 = vpop.f32.mrb[50].mxu1 }
 0x178   : > { %2276 = vmatpush3.bf16.xpose.msra.mxu1 %v1053_v13  ;;  %2285 = vmatprep.mubr.bf16.mxu1 %v1043_v9  ;;  %v2121_v2 = vpop.f32.mrb[51].mxu1 }
 0x179   : > { %v2895_v37 = vpop.f32.mrb[48].mxu0  ;;  %v2122_v5 = vadd.f32 %v2121_v2, %v2120_v59  ;;  %v2123_v9 = vpop.f32.mrb[52].mxu1 }
 0x17a   : > { %v821_v60 = vpop.f32.mrb[49].mxu0  ;;  %v2124_v14 = vpop.f32.mrb[53].mxu1 }
 0x17b   : > { %v823_v61 = vpop.f32.mrb[50].mxu0  ;;  %v2900_v6 = vpack.c.bf16 %v2122_v5, %v2119_v56  ;;  %v2125_v16 = vadd.f32 %v2124_v14, %v2123_v9  ;;  %v2126_v17 = vpop.f32.mrb[54].mxu1 }
 0x17c   : > { %v1055_v63 = vpack.c.bf16 %v823_v61, %v2895_v37  ;;  %v825_v0 = vpop.f32.mrb[51].mxu0  ;;  %v2127_v18 = vpop.f32.mrb[55].mxu1 }
 0x17d   : > { %v1056_v52 = vpack.c.bf16 %v825_v0, %v821_v60  ;;  %v2128_v21 = vadd.f32 %v2127_v18, %v2126_v17  ;;  %v2129_v32 = vpop.f32.mrb[56].mxu1  ;;  %v1067_v60 = vlaneseq }
 0x17e   : > { %v2130_v31 = vpop.f32.mrb[57].mxu1 }
 0x17f   : > { %2277 = vmatprep.subr.bf16.mxu1 %v1056_v52  ;;  %v2902_v24 = vpack.c.bf16 %v2128_v21, %v2125_v16  ;;  %v2131_v39 = vadd.f32 %v2130_v31, %v2129_v32  ;;  %v2132_v36 = vpop.f32.mrb[58].mxu1  ;;  %v2917_v61 = vshrl.u32 %v1067_v60, 7  ;;  %v2922_v19 = vand.u32 127, %v1067_v60 }
 0x180   : > { %2278 = vmatpush3.bf16.xpose.msra.mxu1 %v1056_v52  ;;  %v2133_v40 = vpop.f32.mrb[59].mxu1 }
 0x181   : > { %v829_v3 = vpop.f32.mrb[52].mxu0  ;;  %v2134_v43 = vadd.f32 %v2133_v40, %v2132_v36  ;;  %v2135_v47 = vpop.f32.mrb[60].mxu1  ;;  %v2920_v62 = vadd.s32 16, %v2917_v61  ;;  %v2927_v23 = vadd.s32 24, %v2917_v61  ;;  %vm1086_vm1 = vcmp.ge.s32.totalorder %v2917_v61, %v2922_v19 }
 0x182   : > { %v831_v7 = vpop.f32.mrb[53].mxu0  ;;  %v2136_v10 = vpop.f32.mrb[61].mxu1  ;;  %v2959_v1 = vadd.s32 40, %v2917_v61  ;;  %v2971_v56 = vadd.s32 48, %v2917_v61  ;;  %v2976_v5 = vadd.s32 56, %v2917_v61  ;;  %v2987_v9 = vadd.s32 64, %v2917_v61 }
 0x183   : > { %v833_v8 = vpop.f32.mrb[54].mxu0  ;;  %v2904_v45 = vpack.c.bf16 %v2134_v43, %v2131_v39  ;;  %v2137_v53 = vadd.f32 %v2136_v10, %v2135_v47  ;;  %v2138_v55 = vpop.f32.mrb[62].mxu1  ;;  %vm1088_vm0 = vcmp.ge.s32.totalorder %v2920_v62, %v2922_v19  ;;  %vm1089_vm2 = vcmp.ge.s32.totalorder %v2927_v23, %v2922_v19 }
 0x184   : > { %v1058_v11 = vpack.c.bf16 %v833_v8, %v829_v3  ;;  %v835_v12 = vpop.f32.mrb[55].mxu0  ;;  %v2139_v58 = vpop.f32.mrb[63].mxu1  ;;  %vm1091_vm5 = vcmp.ge.s32.totalorder %v2959_v1, %v2922_v19  ;;  %vm1092_vm6 = vcmp.ge.s32.totalorder %v2971_v56, %v2922_v19  ;;  %vm1093_vm7 = vcmp.ge.s32.totalorder %v2976_v5, %v2922_v19 }
 0x185   : > { %v1059_v15 = vpack.c.bf16 %v835_v12, %v831_v7  ;;  %v2140_v27 = vadd.f32 %v2139_v58, %v2138_v55  ;;  %v2998_v12 = vadd.s32 72, %v2917_v61  ;;  %vm1094_vm8 = vcmp.ge.s32.totalorder %v2987_v9, %v2922_v19 }
 0x186   : > { %v3020_v21 = vadd.s32 88, %v2917_v61  ;;  %v3031_v32 = vadd.s32 96, %v2917_v61  ;;  %v1083_v43 = vadd.s32 120, %v2917_v61 }
 0x187   : > { %2279 = vmatprep.subr.bf16.mxu1 %v1059_v15  ;;  %v2906_v37 = vpack.c.bf16 %v2140_v27, %v2137_v53  ;;  %vm1095_vm9 = vcmp.ge.s32.totalorder %v2998_v12, %v2922_v19 }
 0x188   : > { %2280 = vmatpush3.bf16.xpose.msra.mxu1 %v1059_v15  ;;  %v3009_v15 = vadd.s32 80, %v2917_v61  ;;  %vm1097_vm11 = vcmp.ge.s32.totalorder %v3020_v21, %v2922_v19  ;;  %vm1098_vm12 = vcmp.ge.s32.totalorder %v3031_v32, %v2922_v19  ;;  %vm1101_vm15 = vcmp.ge.s32.totalorder %v1083_v43, %v2922_v19 }
 0x189   : > { %v839_v26 = vpop.f32.mrb[56].mxu0 }
 0x18a   : > { %v841_v25 = vpop.f32.mrb[57].mxu0  ;;  %vm1096_vm10 = vcmp.ge.s32.totalorder %v3009_v15, %v2922_v19 }
 0x18b   : > { %v843_v29 = vpop.f32.mrb[58].mxu0 }
 0x18c   : > { %v1061_v28 = vpack.c.bf16 %v843_v29, %v839_v26  ;;  %v845_v30 = vpop.f32.mrb[59].mxu0 }
 0x18d   : > { %v1062_v35 = vpack.c.bf16 %v845_v30, %v841_v25  ;;  %v3042_v30 = vadd.s32 104, %v2917_v61 }
 0x18f   : > { %2281 = vmatprep.subr.bf16.mxu1 %v1062_v35  ;;  %vm1099_vm13 = vcmp.ge.s32.totalorder %v3042_v30, %v2922_v19 }
 0x190   : > { %2282 = vmatpush3.bf16.xpose.msra.mxu1 %v1062_v35  ;;  %v1082_v35 = vadd.s32 112, %v2917_v61 }
 0x191   : > { %v849_v44 = vpop.f32.mrb[60].mxu0 }
 0x192   : > { %v851_v46 = vpop.f32.mrb[61].mxu0  ;;  %vm1100_vm14 = vcmp.ge.s32.totalorder %v1082_v35, %v2922_v19 }
 0x193   : > { %v853_v49 = vpop.f32.mrb[62].mxu0 }
 0x194   : > { %v1064_v50 = vpack.c.bf16 %v853_v49, %v849_v44  ;;  %v855_v4 = vpop.f32.mrb[63].mxu0 }
 0x195   : > { %v1065_v13 = vpack.c.bf16 %v855_v4, %v851_v46 }
 0x197   : > { %2283 = vmatprep.subr.bf16.mxu1 %v1065_v13 }
 0x198   : > { %2284 = vmatpush3.bf16.xpose.msra.mxu1 %v1065_v13 }
 0x19f   : > { %2286 = vmatmul.mubr.bf16.vlgmr.msra.gmra.mrb[80].mxu1 %v1046_v22  ;;  %v2932_v22 = vadd.s32 8, %v2917_v61 }
 0x1a0   : > { %2289 = vmatprep.mubr.bf16.mxu1 %v1049_v42 }
 0x1a1   : > { %vm1087_vm3 = vcmp.ge.s32.totalorder %v2932_v22, %v2922_v19 }
 0x1a7   : > { %2290 = vmatmul.mubr.bf16.gmra.mrb[84].mxu1 %v1052_v51 }
 0x1a8   : > { %2293 = vmatprep.mubr.bf16.mxu1 %v1055_v63  ;;  %v2951_v63 = vadd.s32 32, %v2917_v61 }
 0x1aa   : > { %vm1090_vm4 = vcmp.ge.s32.totalorder %v2951_v63, %v2922_v19 }
 0x1af   : > { %2294 = vmatmul.mubr.bf16.gmra.mrb[88].mxu1 %v1058_v11 }
 0x1b0   : > { %2297 = vmatprep.mubr.bf16.mxu1 %v1061_v28 }
 0x1b7   : > { %2298 = vmatmul.mubr.bf16.gmra.mrb[92].mxu1 %v1064_v50 }
 0x232   : > { %v2223_v33 = vpop.f32.mrb[64].mxu1 }
 0x233   : > { %v1136_v38 = vpop.f32.mrb[65].mxu1  ;;  %v2937_v42 = vsel %vm1088_vm0, %v2223_v33, -1e+30 }
 0x234   : > { %1219 = vmax.xlane.f32.xlu1 %v2937_v42  ;;  %v2224_v54 = vpop.f32.mrb[66].mxu1  ;;  %v2943_v48 = vsel %vm1086_vm1, %v1136_v38, -1e+30 }
 0x235   : > { %1215 = vmax.xlane.f32.xlu0 %v2943_v48  ;;  %v1139_v51 = vpop.f32.mrb[67].mxu1  ;;  %v2956_v0 = vsel %vm1089_vm2, %v2224_v54, -1e+30 }
 0x236   : > { %v2965_v52 = vsel %vm1087_vm3, %v1139_v51, -1e+30 }
 0x238   : > { %1221 = vmax.xlane.f32.xlu1 %v2956_v0 }
 0x239   : > { %1217 = vmax.xlane.f32.xlu0 %v2965_v52 }
 0x23a   : > { %v2227_v59 = vpop.f32.mrb[68].mxu1 }
 0x23b   : > { %v1152_v2 = vpop.f32.mrb[69].mxu1  ;;  %v3003_v14 = vsel %vm1092_vm6, %v2227_v59, -1e+30 }
 0x23c   : > { %v2228_v3 = vpop.f32.mrb[70].mxu1  ;;  %v2981_v7 = vsel %vm1090_vm4, %v1152_v2, -1e+30 }
 0x23d   : > { %1223 = vmax.xlane.f32.xlu0 %v2981_v7  ;;  %v1155_v8 = vpop.f32.mrb[71].mxu1  ;;  %v3014_v17 = vsel %vm1093_vm7, %v2228_v3, -1e+30 }
 0x23e   : > { %v2992_v11 = vsel %vm1091_vm5, %v1155_v8, -1e+30 }
 0x23f   : > { %1225 = vmax.xlane.f32.xlu1 %v2992_v11 }
 0x241   : > { %1227 = vmax.xlane.f32.xlu0 %v3003_v14 }
 0x242   : > { %v2231_v16 = vpop.f32.mrb[72].mxu1 }
 0x243   : > { %1229 = vmax.xlane.f32.xlu1 %v3014_v17  ;;  %v1168_v18 = vpop.f32.mrb[73].mxu1  ;;  %v3047_v31 = vsel %vm1096_vm10, %v2231_v16, -1e+30 }
 0x244   : > { %v2232_v26 = vpop.f32.mrb[74].mxu1  ;;  %v3025_v25 = vsel %vm1094_vm8, %v1168_v18, -1e+30 }
 0x245   : > { %1231 = vmax.xlane.f32.xlu0 %v3025_v25  ;;  %v1171_v29 = vpop.f32.mrb[75].mxu1  ;;  %v3056_v36 = vsel %vm1097_vm11, %v2232_v26, -1e+30 }
 0x246   : > { %v3036_v28 = vsel %vm1095_vm9, %v1171_v29, -1e+30 }
 0x247   : > { %1233 = vmax.xlane.f32.xlu1 %v3036_v28 }
 0x249   : > { %1235 = vmax.xlane.f32.xlu0 %v3047_v31 }
 0x24a   : > { %v2235_v39 = vpop.f32.mrb[76].mxu1 }
 0x24b   : > { %1237 = vmax.xlane.f32.xlu1 %v3056_v36  ;;  %v1184_v40 = vpop.f32.mrb[77].mxu1  ;;  %v3078_v50 = vsel %vm1100_vm14, %v2235_v39, -1e+30 }
 0x24c   : > { %v2236_v44 = vpop.f32.mrb[78].mxu1  ;;  %v3065_v46 = vsel %vm1098_vm12, %v1184_v40, -1e+30 }
 0x24d   : > { %1239 = vmax.xlane.f32.xlu0 %v3065_v46  ;;  %v1187_v49 = vpop.f32.mrb[79].mxu1  ;;  %v3083_v4 = vsel %vm1101_vm15, %v2236_v44, -1e+30 }
 0x24e   : > { %v3072_v47 = vsel %vm1099_vm13, %v1187_v49, -1e+30 }
 0x24f   : > { %1241 = vmax.xlane.f32.xlu1 %v3072_v47 }
 0x251   : > { %1243 = vmax.xlane.f32.xlu0 %v3078_v50 }
 0x253   : > { %1245 = vmax.xlane.f32.xlu1 %v3083_v4 }
 0x272   : > { %v2287_v10 = vpop.f32.mrb[80].mxu1 }
 0x273   : > { %v1515_v13 = vpop.f32.mrb[81].mxu1  ;;  %v3089_v53 = vsel %vm1088_vm0, %v2287_v10, -1e+30  ;;  %vm1464_vm0 = vcmask 523264  }
 0x274   : > { %v2288_v55 = vpop.f32.mrb[82].mxu1  ;;  %v3094_v58 = vsel %vm1086_vm1, %v1515_v13, -1e+30 }
 0x275   : > { %1594 = vmax.xlane.f32.xlu0 %v3094_v58  ;;  %v1518_v27 = vpop.f32.mrb[83].mxu1  ;;  %v3100_v60 = vsel %vm1089_vm2, %v2288_v55, -1e+30 }
 0x276   : > { %v3105_v62 = vsel %vm1087_vm3, %v1518_v27, -1e+30 }
 0x277   : > { %1596 = vmax.xlane.f32.xlu1 %v3105_v62 }
 0x279   : > { %1598 = vmax.xlane.f32.xlu0 %v3089_v53 }
 0x27a   : > { %v2291_v61 = vpop.f32.mrb[84].mxu1 }
 0x27b   : > { %1600 = vmax.xlane.f32.xlu1 %v3100_v60  ;;  %v1531_v33 = vpop.f32.mrb[85].mxu1  ;;  %v3113_v38 = vsel %vm1092_vm6, %v2291_v61, -1e+30 }
 0x27c   : > { %v2292_v23 = vpop.f32.mrb[86].mxu1  ;;  %v3118_v22 = vsel %vm1090_vm4, %v1531_v33, -1e+30 }
 0x27d   : > { %1602 = vmax.xlane.f32.xlu0 %v3118_v22  ;;  %v1534_v54 = vpop.f32.mrb[87].mxu1  ;;  %v3124_v51 = vsel %vm1093_vm7, %v2292_v23, -1e+30 }
 0x27e   : > { %v3129_v56 = vsel %vm1091_vm5, %v1534_v54, -1e+30 }
 0x27f   : > { %1604 = vmax.xlane.f32.xlu1 %v3129_v56 }
 0x281   : > { %1606 = vmax.xlane.f32.xlu0 %v3113_v38 }
 0x282   : > { %v2295_v63 = vpop.f32.mrb[88].mxu1 }
 0x283   : > { %1608 = vmax.xlane.f32.xlu1 %v3124_v51  ;;  %v1547_v59 = vpop.f32.mrb[89].mxu1  ;;  %v3137_v2 = vsel %vm1096_vm10, %v2295_v63, -1e+30 }
 0x284   : > { %v2296_v5 = vpop.f32.mrb[90].mxu1  ;;  %v3142_v1 = vsel %vm1094_vm8, %v1547_v59, -1e+30 }
 0x285   : > { %1610 = vmax.xlane.f32.xlu0 %v3142_v1  ;;  %v1550_v3 = vpop.f32.mrb[91].mxu1  ;;  %v3148_v8 = vsel %vm1097_vm11, %v2296_v5, -1e+30 }
 0x286   : > { %v3153_v15 = vsel %vm1095_vm9, %v1550_v3, -1e+30 }
 0x287   : > { %1612 = vmax.xlane.f32.xlu1 %v3153_v15 }
 0x289   : > { %1614 = vmax.xlane.f32.xlu0 %v3137_v2 }
 0x28a   : > { %v2299_v9 = vpop.f32.mrb[92].mxu1 }
 0x28b   : > { %1616 = vmax.xlane.f32.xlu1 %v3148_v8  ;;  %v1563_v16 = vpop.f32.mrb[93].mxu1  ;;  %v3160_v18 = vsel %vm1100_vm14, %v2299_v9, -1e+30 }
 0x28c   : > { %v2300_v21 = vpop.f32.mrb[94].mxu1  ;;  %v3165_v26 = vsel %vm1098_vm12, %v1563_v16, -1e+30 }
 0x28d   : > { %1618 = vmax.xlane.f32.xlu0 %v3165_v26  ;;  %v1566_v12 = vpop.f32.mrb[95].mxu1  ;;  %v3170_v29 = vsel %vm1101_vm15, %v2300_v21, -1e+30 }
 0x28e   : > { %v3175_v39 = vsel %vm1099_vm13, %v1566_v12, -1e+30 }
 0x28f   : > { %1620 = vmax.xlane.f32.xlu1 %v3175_v39 }
 0x291   : > { %1622 = vmax.xlane.f32.xlu0 %v3160_v18 }
 0x293   : > { %1624 = vmax.xlane.f32.xlu1 %v3170_v29 }
 0x2c1   : > { %v1220_v32 = vpop.xlane.xlu1 %1219 }
 0x2c2   : > { %v1249_v35 = vsub.f32 %v2937_v42, %v1220_v32  ;;  %v1216_v40 = vpop.xlane.xlu0 %1215 }
 0x2c3   : > { %v1247_v44 = vsub.f32 %v2943_v48, %v1216_v40 }
 0x2c4   : > { %v1267_v10 = vmul.f32 1.442695, %v1249_v35 }
 0x2c5   : > { %v1263_v43 = vmul.f32 1.442695, %v1247_v44  ;;  %v1222_v49 = vpop.xlane.xlu1 %1221 }
 0x2c6   : > { %v1250_v13 = vsub.f32 %v2956_v0, %v1222_v49  ;;  %v1218_v19 = vpop.xlane.xlu0 %1217 }
 0x2c7   : > { %2453 = vpow2.f32 %v1263_v43  ;;  %v1248_v30 = vsub.f32 %v2965_v52, %v1218_v19 }
 0x2c8   : > { %2455 = vpow2.f32 %v1267_v10  ;;  %v1269_v27 = vmul.f32 1.442695, %v1250_v13 }
 0x2c9   : > { %v1265_v55 = vmul.f32 1.442695, %v1248_v30 }
 0x2ca   : > { %v1224_v61 = vpop.xlane.xlu0 %1223 }
 0x2cb   : > { %2457 = vpow2.f32 %v1265_v55  ;;  %v1251_v33 = vsub.f32 %v2981_v7, %v1224_v61 }
 0x2cc   : > { %v1226_v42 = vpop.xlane.xlu1 %1225  ;;  %2459 = vpow2.f32 %v1269_v27 }
 0x2cd   : > { %v1271_v23 = vmul.f32 1.442695, %v1251_v33  ;;  %v1252_v48 = vsub.f32 %v2992_v11, %v1226_v42 }
 0x2ce   : > { %v1228_v54 = vpop.xlane.xlu0 %1227 }
 0x2cf   : > { %2461 = vpow2.f32 %v1271_v23  ;;  %v1273_v63 = vmul.f32 1.442695, %v1252_v48  ;;  %v1253_v0 = vsub.f32 %v3003_v14, %v1228_v54 }
 0x2d0   : > { %v1230_v59 = vpop.xlane.xlu1 %1229 }
 0x2d1   : > { %v3187_v5 = vpop.eup %2453  ;;  %v1275_v52 = vmul.f32 1.442695, %v1253_v0  ;;  %v1254_v3 = vsub.f32 %v3014_v17, %v1230_v59  ;;  %2463 = vpow2.f32 %v1273_v63 }
 0x2d2   : > { %v1232_v9 = vpop.xlane.xlu0 %1231  ;;  %1295 = vadd.xlane.f32.xlu0 %v3187_v5  ;;  %v3192_v16 = vpop.eup %2455 }
 0x2d3   : > { %2465 = vpow2.f32 %v1275_v52  ;;  %v1277_v7 = vmul.f32 1.442695, %v1254_v3  ;;  %v1255_v11 = vsub.f32 %v3025_v25, %v1232_v9 }
 0x2d4   : > { %v1234_v21 = vpop.xlane.xlu1 %1233 }
 0x2d5   : > { %v3194_v12 = vpop.eup %2457  ;;  %v1279_v14 = vmul.f32 1.442695, %v1255_v11  ;;  %v1256_v32 = vsub.f32 %v3036_v28, %v1234_v21  ;;  %2467 = vpow2.f32 %v1277_v7 }
 0x2d6   : > { %v1236_v35 = vpop.xlane.xlu0 %1235  ;;  %1299 = vadd.xlane.f32.xlu0 %v3192_v16  ;;  %1297 = vadd.xlane.f32.xlu1 %v3194_v12  ;;  %v3200_v44 = vpop.eup %2459 }
 0x2d7   : > { %2469 = vpow2.f32 %v1279_v14  ;;  %v1281_v17 = vmul.f32 1.442695, %v1256_v32  ;;  %v1257_v40 = vsub.f32 %v3047_v31, %v1236_v35 }
 0x2d8   : > { %v1238_v25 = vpop.xlane.xlu1 %1237 }
 0x2d9   : > { %v3202_v43 = vpop.eup %2461  ;;  %v1283_v49 = vmul.f32 1.442695, %v1257_v40  ;;  %v1258_v10 = vsub.f32 %v3056_v36, %v1238_v25  ;;  %2471 = vpow2.f32 %v1281_v17 }
 0x2da   : > { %v1240_v28 = vpop.xlane.xlu0 %1239  ;;  %1303 = vadd.xlane.f32.xlu0 %v3202_v43  ;;  %1301 = vadd.xlane.f32.xlu1 %v3200_v44 }
 0x2db   : > { %2473 = vpow2.f32 %v1283_v49  ;;  %v1285_v13 = vmul.f32 1.442695, %v1258_v10  ;;  %v1259_v19 = vsub.f32 %v3065_v46, %v1240_v28  ;;  %v3208_v30 = vpop.eup %2463 }
 0x2dc   : > { %v1242_v31 = vpop.xlane.xlu1 %1241 }
 0x2dd   : > { %v3210_v55 = vpop.eup %2465  ;;  %v1287_v27 = vmul.f32 1.442695, %v1259_v19  ;;  %v1260_v61 = vsub.f32 %v3072_v47, %v1242_v31  ;;  %2475 = vpow2.f32 %v1285_v13 }
 0x2de   : > { %v1244_v36 = vpop.xlane.xlu0 %1243  ;;  %1307 = vadd.xlane.f32.xlu0 %v3210_v55  ;;  %1305 = vadd.xlane.f32.xlu1 %v3208_v30 }
 0x2df   : > { %2477 = vpow2.f32 %v1287_v27  ;;  %v1289_v33 = vmul.f32 1.442695, %v1260_v61  ;;  %v1261_v42 = vsub.f32 %v3078_v50, %v1244_v36  ;;  %v3216_v23 = vpop.eup %2467 }
 0x2e0   : > { %v1246_v46 = vpop.xlane.xlu1 %1245 }
 0x2e1   : > { %v3218_v48 = vpop.eup %2469  ;;  %v1291_v54 = vmul.f32 1.442695, %v1261_v42  ;;  %v1262_v63 = vsub.f32 %v3083_v4, %v1246_v46  ;;  %2479 = vpow2.f32 %v1289_v33 }
 0x2e2   : > { %1311 = vadd.xlane.f32.xlu0 %v3218_v48  ;;  %1309 = vadd.xlane.f32.xlu1 %v3216_v23 }
 0x2e3   : > { %2481 = vpow2.f32 %v1291_v54  ;;  %v1293_v47 = vmul.f32 1.442695, %v1262_v63  ;;  %v3223_v0 = vpop.eup %2471 }
 0x2e5   : > { %v3225_v59 = vpop.eup %2473  ;;  %2483 = vpow2.f32 %v1293_v47 }
 0x2e6   : > { %1315 = vadd.xlane.f32.xlu0 %v3225_v59  ;;  %1313 = vadd.xlane.f32.xlu1 %v3223_v0 }
 0x2e7   : > { %v3229_v50 = vpop.eup %2475 }
 0x2e9   : > { %v3231_v52 = vpop.eup %2477 }
 0x2ea   : > { %1319 = vadd.xlane.f32.xlu0 %v3231_v52  ;;  %1317 = vadd.xlane.f32.xlu1 %v3229_v50 }
 0x2eb   : > { %v3235_v4 = vpop.eup %2479 }
 0x2ed   : > { %v3237_v3 = vpop.eup %2481 }
 0x2ee   : > { %1323 = vadd.xlane.f32.xlu0 %v3237_v3  ;;  %1321 = vadd.xlane.f32.xlu1 %v3235_v4 }
 0x2ef   : > { %v3241_v9 = vpop.eup %2483 }
 0x2f2   : > { %1325 = vadd.xlane.f32.xlu1 %v3241_v9 }
 0x302   : > { %v1595_v7 = vpop.xlane.xlu0 %1594 }
 0x303   : > { %v1626_v11 = vsub.f32 %v3094_v58, %v1595_v7 }
 0x304   : > { %v1597_v21 = vpop.xlane.xlu1 %1596 }
 0x305   : > { %v1642_v14 = vmul.f32 1.442695, %v1626_v11  ;;  %v1627_v32 = vsub.f32 %v3105_v62, %v1597_v21 }
 0x306   : > { %v1599_v35 = vpop.xlane.xlu0 %1598 }
 0x307   : > { %2485 = vpow2.f32 %v1642_v14  ;;  %v1644_v17 = vmul.f32 1.442695, %v1627_v32  ;;  %v1628_v40 = vsub.f32 %v3089_v53, %v1599_v35 }
 0x308   : > { %v1601_v25 = vpop.xlane.xlu1 %1600 }
 0x309   : > { %2487 = vpow2.f32 %v1644_v17  ;;  %v1646_v49 = vmul.f32 1.442695, %v1628_v40  ;;  %v1629_v10 = vsub.f32 %v3100_v60, %v1601_v25 }
 0x30a   : > { %v1603_v28 = vpop.xlane.xlu0 %1602 }
 0x30b   : > { %2489 = vpow2.f32 %v1646_v49  ;;  %v1648_v13 = vmul.f32 1.442695, %v1629_v10  ;;  %v1630_v19 = vsub.f32 %v3118_v22, %v1603_v28 }
 0x30c   : > { %v1605_v58 = vpop.xlane.xlu1 %1604 }
 0x30d   : > { %2491 = vpow2.f32 %v1648_v13  ;;  %v1650_v31 = vmul.f32 1.442695, %v1630_v19  ;;  %v1631_v62 = vsub.f32 %v3129_v56, %v1605_v58 }
 0x30e   : > { %v1607_v27 = vpop.xlane.xlu0 %1606 }
 0x30f   : > { %2493 = vpow2.f32 %v1650_v31  ;;  %v1652_v61 = vmul.f32 1.442695, %v1631_v62  ;;  %v1632_v53 = vsub.f32 %v3113_v38, %v1607_v27 }
 0x310   : > { %v1609_v36 = vpop.xlane.xlu1 %1608 }
 0x311   : > { %v3251_v33 = vpop.eup %2485  ;;  %2495 = vpow2.f32 %v1652_v61  ;;  %v1654_v60 = vmul.f32 1.442695, %v1632_v53  ;;  %v1633_v42 = vsub.f32 %v3124_v51, %v1609_v36 }
 0x312   : > { %v1611_v46 = vpop.xlane.xlu0 %1610  ;;  %1674 = vadd.xlane.f32.xlu0 %v3251_v33 }
 0x313   : > { %v3255_v22 = vpop.eup %2487  ;;  %2497 = vpow2.f32 %v1654_v60  ;;  %v1656_v54 = vmul.f32 1.442695, %v1633_v42  ;;  %v1634_v56 = vsub.f32 %v3142_v1, %v1611_v46 }
 0x314   : > { %v1613_v63 = vpop.xlane.xlu1 %1612  ;;  %1676 = vadd.xlane.f32.xlu1 %v3255_v22 }
 0x315   : > { %v3259_v38 = vpop.eup %2489  ;;  %2499 = vpow2.f32 %v1656_v54  ;;  %v1658_v47 = vmul.f32 1.442695, %v1634_v56  ;;  %v1635_v7 = vsub.f32 %v3153_v15, %v1613_v63 }
 0x316   : > { %v1615_v11 = vpop.xlane.xlu0 %1614  ;;  %1678 = vadd.xlane.f32.xlu0 %v3259_v38 }
 0x317   : > { %v3263_v51 = vpop.eup %2491  ;;  %2501 = vpow2.f32 %v1658_v47  ;;  %v1660_v21 = vmul.f32 1.442695, %v1635_v7  ;;  %v1636_v14 = vsub.f32 %v3137_v2, %v1615_v11 }
 0x318   : > { %v1617_v32 = vpop.xlane.xlu1 %1616  ;;  %1680 = vadd.xlane.f32.xlu1 %v3263_v51 }
 0x319   : > { %v3267_v1 = vpop.eup %2493  ;;  %2503 = vpow2.f32 %v1660_v21  ;;  %v1662_v35 = vmul.f32 1.442695, %v1636_v14  ;;  %v1637_v17 = vsub.f32 %v3148_v8, %v1617_v32 }
 0x31a   : > { %1682 = vadd.xlane.f32.xlu0 %v3267_v1  ;;  %v1619_v15 = vpop.xlane.xlu0 %1618 }
 0x31b   : > { %v3271_v40 = vpop.eup %2495  ;;  %2505 = vpow2.f32 %v1662_v35  ;;  %v1664_v25 = vmul.f32 1.442695, %v1637_v17  ;;  %v1638_v49 = vsub.f32 %v3165_v26, %v1619_v15 }
 0x31c   : > { %1684 = vadd.xlane.f32.xlu1 %v3271_v40  ;;  %v1621_v2 = vpop.xlane.xlu1 %1620 }
 0x31d   : > { %v3275_v10 = vpop.eup %2497  ;;  %2507 = vpow2.f32 %v1664_v25  ;;  %v1666_v28 = vmul.f32 1.442695, %v1638_v49  ;;  %v1639_v13 = vsub.f32 %v3175_v39, %v1621_v2 }
 0x31e   : > { %1686 = vadd.xlane.f32.xlu0 %v3275_v10  ;;  %v1623_v8 = vpop.xlane.xlu0 %1622 }
 0x31f   : > { %v3279_v19 = vpop.eup %2499  ;;  %2509 = vpow2.f32 %v1666_v28  ;;  %v1668_v58 = vmul.f32 1.442695, %v1639_v13  ;;  %v1640_v31 = vsub.f32 %v3160_v18, %v1623_v8 }
 0x320   : > { %1688 = vadd.xlane.f32.xlu1 %v3279_v19  ;;  %v1625_v26 = vpop.xlane.xlu1 %1624 }
 0x321   : > { %v3283_v62 = vpop.eup %2501  ;;  %2511 = vpow2.f32 %v1668_v58  ;;  %v1670_v27 = vmul.f32 1.442695, %v1640_v31  ;;  %v1641_v61 = vsub.f32 %v3170_v29, %v1625_v26 }
 0x322   : > { %1690 = vadd.xlane.f32.xlu0 %v3283_v62 }
 0x323   : > { %v3287_v39 = vpop.eup %2503  ;;  %2513 = vpow2.f32 %v1670_v27  ;;  %v1672_v53 = vmul.f32 1.442695, %v1641_v61 }
 0x324   : > { %1692 = vadd.xlane.f32.xlu1 %v3287_v39 }
 0x325   : > { %v3290_v36 = vpop.eup %2505  ;;  %2515 = vpow2.f32 %v1672_v53 }
 0x326   : > { %1694 = vadd.xlane.f32.xlu0 %v3290_v36 }
 0x327   : > { %v3293_v18 = vpop.eup %2507 }
 0x328   : > { %1696 = vadd.xlane.f32.xlu1 %v3293_v18 }
 0x329   : > { %v3296_v60 = vpop.eup %2509 }
 0x32a   : > { %1698 = vadd.xlane.f32.xlu0 %v3296_v60 }
 0x32b   : > { %v3299_v29 = vpop.eup %2511 }
 0x32c   : > { %1700 = vadd.xlane.f32.xlu1 %v3299_v29 }
 0x32d   : > { %v3302_v42 = vpop.eup %2513 }
 0x32e   : > { %1702 = vadd.xlane.f32.xlu0 %v3302_v42 }
 0x32f   : > { %v3305_v46 = vpop.eup %2515 }
 0x330   : > { %1704 = vadd.xlane.f32.xlu1 %v3305_v46 }
 0x35f   : > { %v1296_v54 = vpop.xlane.xlu0 %1295 }
 0x360   : > { %2517 = vrcp.f32 %v1296_v54 }
 0x363   : > { %v1300_v56 = vpop.xlane.xlu0 %1299  ;;  %v1298_v63 = vpop.xlane.xlu1 %1297 }
 0x364   : > { %2519 = vrcp.f32 %v1298_v63 }
 0x365   : > { %2521 = vrcp.f32 %v1300_v56 }
 0x367   : > { %v1304_v47 = vpop.xlane.xlu0 %1303  ;;  %v1302_v7 = vpop.xlane.xlu1 %1301 }
 0x368   : > { %2523 = vrcp.f32 %v1302_v7 }
 0x369   : > { %2525 = vrcp.f32 %v1304_v47 }
 0x36a   : > { %v2518_v14 = vpop.eup %2517 }
 0x36b   : > { %v1308_v11 = vpop.xlane.xlu0 %1307  ;;  %v1306_v21 = vpop.xlane.xlu1 %1305  ;;  %v1343_v15 = vmul.f32 %v2518_v14, %v3187_v5 }
 0x36c   : > { %2527 = vrcp.f32 %v1306_v21 }
 0x36d   : > { %2529 = vrcp.f32 %v1308_v11 }
 0x36e   : > { %v2520_v32 = vpop.eup %2519 }
 0x36f   : > { %v1312_v35 = vpop.xlane.xlu0 %1311  ;;  %v1310_v17 = vpop.xlane.xlu1 %1309  ;;  %v1344_v25 = vmul.f32 %v2520_v32, %v3194_v12 }
 0x370   : > { %v2522_v49 = vpop.eup %2521  ;;  %2531 = vrcp.f32 %v1310_v17 }
 0x371   : > { %v1359_v2 = vpack.c.bf16 %v1344_v25, %v1343_v15  ;;  %2533 = vrcp.f32 %v1312_v35  ;;  %v1345_v58 = vmul.f32 %v2522_v49, %v3192_v16 }
 0x372   : > { %v2524_v28 = vpop.eup %2523 }
 0x373   : > { %v1316_v13 = vpop.xlane.xlu0 %1315  ;;  %v1314_v8 = vpop.xlane.xlu1 %1313  ;;  %v1346_v31 = vmul.f32 %v2524_v28, %v3200_v44  ;;  %2253 = vmatprep.mubr.bf16.mxu0 %v1359_v2 }
 0x374   : > { %v2526_v26 = vpop.eup %2525  ;;  %2535 = vrcp.f32 %v1314_v8 }
 0x375   : > { %v1360_v27 = vpack.c.bf16 %v1346_v31, %v1345_v58  ;;  %2537 = vrcp.f32 %v1316_v13  ;;  %v1347_v12 = vmul.f32 %v2526_v26, %v3202_v43 }
 0x376   : > { %v2528_v61 = vpop.eup %2527 }
 0x377   : > { %v1320_v5 = vpop.xlane.xlu0 %1319  ;;  %v1318_v53 = vpop.xlane.xlu1 %1317  ;;  %2254 = vmatmul.mubr.bf16.vlgmr.msra.gmra.mrb[64].mxu0 %v1360_v27  ;;  %v1348_v54 = vmul.f32 %v2528_v61, %v3208_v30 }
 0x378   : > { %v2530_v56 = vpop.eup %2529  ;;  %2302 = vmatpush3.bf16.msra.mxu0 %v2854_v20  ;;  %2539 = vrcp.f32 %v1318_v53 }
 0x379   : > { %2303 = vmatprep.subr.bf16.mxu0 %v2869_v34  ;;  %v1361_v16 = vpack.c.bf16 %v1348_v54, %v1347_v12  ;;  %2541 = vrcp.f32 %v1320_v5  ;;  %v1349_v7 = vmul.f32 %v2530_v56, %v3210_v55 }
 0x37a   : > { %v2532_v44 = vpop.eup %2531 }
 0x37b   : > { %v1324_v63 = vpop.xlane.xlu0 %1323  ;;  %v1322_v47 = vpop.xlane.xlu1 %1321  ;;  %2257 = vmatprep.mubr.bf16.mxu0 %v1361_v16  ;;  %v1350_v11 = vmul.f32 %v2532_v44, %v3216_v23 }
 0x37c   : > { %v2534_v21 = vpop.eup %2533  ;;  %2304 = vmatpush3.bf16.msra.mxu0 %v2869_v34  ;;  %2543 = vrcp.f32 %v1322_v47 }
 0x37d   : > { %2545 = vrcp.f32 %v1324_v63  ;;  %2305 = vmatprep.subr.bf16.mxu0 %v2883_v57  ;;  %v1362_v20 = vpack.c.bf16 %v1350_v11, %v1349_v7  ;;  %v1351_v14 = vmul.f32 %v2534_v21, %v3218_v48 }
 0x37e   : > { %v2536_v43 = vpop.eup %2535 }
 0x37f   : > { %v1326_v30 = vpop.xlane.xlu1 %1325  ;;  %2258 = vmatmul.mubr.bf16.gmra.mrb[68].mxu0 %v1362_v20  ;;  %v1352_v32 = vmul.f32 %v2536_v43, %v3223_v0  ;;  %v2538_v35 = vpop.eup %2537 }
 0x380   : > { %2547 = vrcp.f32 %v1326_v30  ;;  %2306 = vmatpush3.bf16.msra.mxu0 %v2883_v57  ;;  %v1353_v23 = vmul.f32 %v2538_v35, %v3225_v59 }
 0x381   : > { %2307 = vmatprep.subr.bf16.mxu0 %v2897_v41  ;;  %v1363_v55 = vpack.c.bf16 %v1352_v32, %v1351_v14 }
 0x382   : > { %v2540_v34 = vpop.eup %2539 }
 0x383   : > { %2261 = vmatprep.mubr.bf16.mxu0 %v1363_v55  ;;  %v1354_v17 = vmul.f32 %v2540_v34, %v3229_v50  ;;  %v2542_v15 = vpop.eup %2541 }
 0x384   : > { %2308 = vmatpush3.bf16.msra.mxu0 %v2897_v41  ;;  %v1355_v57 = vmul.f32 %v2542_v15, %v3231_v52 }
 0x385   : > { %2309 = vmatprep.subr.bf16.mxu0 %v2900_v6  ;;  %v1364_v48 = vpack.c.bf16 %v1354_v17, %v1353_v23 }
 0x386   : > { %v2544_v25 = vpop.eup %2543 }
 0x387   : > { %v2546_v0 = vpop.eup %2545  ;;  %2262 = vmatmul.mubr.bf16.gmra.mrb[72].mxu0 %v1364_v48  ;;  %v1356_v49 = vmul.f32 %v2544_v25, %v3235_v4 }
 0x388   : > { %2310 = vmatpush3.bf16.msra.mxu0 %v2900_v6  ;;  %v1357_v50 = vmul.f32 %v2546_v0, %v3237_v3 }
 0x389   : > { %2311 = vmatprep.subr.bf16.mxu0 %v2902_v24  ;;  %v1365_v59 = vpack.c.bf16 %v1356_v49, %v1355_v57 }
 0x38a   : > { %v2548_v2 = vpop.eup %2547 }
 0x38b   : > { %v1358_v41 = vmul.f32 %v2548_v2, %v3241_v9  ;;  %2265 = vmatprep.mubr.bf16.mxu0 %v1365_v59 }
 0x38c   : > { %2312 = vmatpush3.bf16.msra.mxu0 %v2902_v24 }
 0x38d   : > { %v1366_v28 = vpack.c.bf16 %v1358_v41, %v1357_v50  ;;  %2313 = vmatprep.subr.bf16.mxu0 %v2904_v45 }
 0x38f   : > { %2266 = vmatmul.mubr.bf16.gmra.mrb[76].mxu0 %v1366_v28 }
 0x390   : > { %2314 = vmatpush3.bf16.msra.mxu0 %v2904_v45 }
 0x391   : > { %2315 = vmatprep.subr.bf16.mxu0 %v2906_v37 }
 0x394   : > { %2316 = vmatpush3.bf16.msra.mxu0 %v2906_v37 }
 0x39f   : > { %v1675_v6 = vpop.xlane.xlu0 %1674 }
 0x3a0   : > { %2549 = vrcp.f32 %v1675_v6 }
 0x3a1   : > { %v1677_v52 = vpop.xlane.xlu1 %1676 }
 0x3a2   : > { %2551 = vrcp.f32 %v1677_v52 }
 0x3a3   : > { %v1679_v4 = vpop.xlane.xlu0 %1678 }
 0x3a4   : > { %2553 = vrcp.f32 %v1679_v4 }
 0x3a5   : > { %v1681_v3 = vpop.xlane.xlu1 %1680 }
 0x3a6   : > { %2555 = vrcp.f32 %v1681_v3 }
 0x3a7   : > { %v1683_v9 = vpop.xlane.xlu0 %1682 }
 0x3a8   : > { %2557 = vrcp.f32 %v1683_v9 }
 0x3a9   : > { %v1685_v24 = vpop.xlane.xlu1 %1684 }
 0x3aa   : > { %v2550_v13 = vpop.eup %2549  ;;  %2559 = vrcp.f32 %v1685_v24 }
 0x3ab   : > { %v1687_v8 = vpop.xlane.xlu0 %1686  ;;  %v1722_v31 = vmul.f32 %v2550_v13, %v3251_v33 }
 0x3ac   : > { %v2552_v58 = vpop.eup %2551  ;;  %2561 = vrcp.f32 %v1687_v8 }
 0x3ad   : > { %v1689_v45 = vpop.xlane.xlu1 %1688  ;;  %v1723_v37 = vmul.f32 %v2552_v58, %v3255_v22 }
 0x3ae   : > { %v2554_v26 = vpop.eup %2553  ;;  %2563 = vrcp.f32 %v1689_v45 }
 0x3af   : > { %v1691_v27 = vpop.xlane.xlu0 %1690  ;;  %v1738_v61 = vpack.c.bf16 %v1723_v37, %v1722_v31  ;;  %v1724_v53 = vmul.f32 %v2554_v26, %v3259_v38 }
 0x3b0   : > { %v2556_v5 = vpop.eup %2555  ;;  %2565 = vrcp.f32 %v1691_v27 }
 0x3b1   : > { %v1725_v12 = vmul.f32 %v2556_v5, %v3263_v51  ;;  %2317 = vmatprep.mubr.bf16.mxu0 %v1738_v61  ;;  %v1693_v54 = vpop.xlane.xlu1 %1692 }
 0x3b2   : > { %v2558_v56 = vpop.eup %2557  ;;  %2567 = vrcp.f32 %v1693_v54 }
 0x3b3   : > { %v1695_v16 = vpop.xlane.xlu0 %1694  ;;  %v1739_v44 = vpack.c.bf16 %v1725_v12, %v1724_v53  ;;  %v1726_v22 = vmul.f32 %v2558_v56, %v3267_v1 }
 0x3b4   : > { %v2560_v63 = vpop.eup %2559  ;;  %2569 = vrcp.f32 %v1695_v16 }
 0x3b5   : > { %2318 = vmatmul.mubr.bf16.vlgmr.msra.gmra.mrb[80].mxu0 %v1739_v44  ;;  %v1697_v33 = vpop.xlane.xlu1 %1696  ;;  %v1727_v47 = vmul.f32 %v2560_v63, %v3271_v40 }
 0x3b6   : > { %v2562_v7 = vpop.eup %2561  ;;  %2571 = vrcp.f32 %v1697_v33 }
 0x3b7   : > { %v1699_v11 = vpop.xlane.xlu0 %1698  ;;  %v1740_v38 = vpack.c.bf16 %v1727_v47, %v1726_v22  ;;  %v1728_v20 = vmul.f32 %v2562_v7, %v3275_v10 }
 0x3b8   : > { %v2564_v21 = vpop.eup %2563  ;;  %2573 = vrcp.f32 %v1699_v11 }
 0x3b9   : > { %2321 = vmatprep.mubr.bf16.mxu0 %v1740_v38  ;;  %v1701_v51 = vpop.xlane.xlu1 %1700  ;;  %v1729_v43 = vmul.f32 %v2564_v21, %v3279_v19 }
 0x3ba   : > { %v2566_v30 = vpop.eup %2565  ;;  %2575 = vrcp.f32 %v1701_v51 }
 0x3bb   : > { %v1703_v14 = vpop.xlane.xlu0 %1702  ;;  %v1741_v32 = vpack.c.bf16 %v1729_v43, %v1728_v20  ;;  %v1730_v40 = vmul.f32 %v2566_v30, %v3283_v62 }
 0x3bc   : > { %v2568_v35 = vpop.eup %2567  ;;  %2577 = vrcp.f32 %v1703_v14 }
 0x3bd   : > { %2322 = vmatmul.mubr.bf16.gmra.mrb[84].mxu0 %v1741_v32  ;;  %v1705_v1 = vpop.xlane.xlu1 %1704  ;;  %v1731_v55 = vmul.f32 %v2568_v35, %v3287_v39 }
 0x3be   : > { %v2570_v34 = vpop.eup %2569  ;;  %2579 = vrcp.f32 %v1705_v1 }
 0x3bf   : > { %v1742_v23 = vpack.c.bf16 %v1731_v55, %v1730_v40  ;;  %v1732_v10 = vmul.f32 %v2570_v34, %v3290_v36 }
 0x3c0   : > { %v2572_v17 = vpop.eup %2571 }
 0x3c1   : > { %2325 = vmatprep.mubr.bf16.mxu0 %v1742_v23  ;;  %v1733_v19 = vmul.f32 %v2572_v17, %v3293_v18 }
 0x3c2   : > { %v2574_v15 = vpop.eup %2573 }
 0x3c3   : > { %v1743_v48 = vpack.c.bf16 %v1733_v19, %v1732_v10  ;;  %v1734_v0 = vmul.f32 %v2574_v15, %v3296_v60 }
 0x3c4   : > { %v2576_v25 = vpop.eup %2575 }
 0x3c5   : > { %2326 = vmatmul.mubr.bf16.gmra.mrb[88].mxu0 %v1743_v48  ;;  %v1735_v62 = vmul.f32 %v2576_v25, %v3299_v29 }
 0x3c6   : > { %v2578_v57 = vpop.eup %2577 }
 0x3c7   : > { %v1744_v39 = vpack.c.bf16 %v1735_v62, %v1734_v0  ;;  %v1736_v2 = vmul.f32 %v2578_v57, %v3302_v42 }
 0x3c8   : > { %v2580_v49 = vpop.eup %2579 }
 0x3c9   : > { %2329 = vmatprep.mubr.bf16.mxu0 %v1744_v39  ;;  %v1737_v59 = vmul.f32 %v2580_v49, %v3305_v46 }
 0x3cb   : > { %v1745_v36 = vpack.c.bf16 %v1737_v59, %v1736_v2 }
 0x3cd   : > { %2330 = vmatmul.mubr.bf16.gmra.mrb[92].mxu0 %v1745_v36 }
 0x44a   : > { %v2255_v18 = vpop.f32.mrb[64].mxu0 }
 0x44b   : > { %1467 = vst.msk [vmem:[%s3360_s14 + $0x10] sm:$0xff] %vm1464_vm0, %v2255_v18  ;;  %v1401_v60 = vpop.f32.mrb[65].mxu0 }
 0x44c   : > { %1465 = vst.msk [vmem:[%s3360_s14] sm:$0xff] %vm1464_vm0, %v1401_v60  ;;  %v2256_v29 = vpop.f32.mrb[66].mxu0 }
 0x44d   : > { %1468 = vst.msk [vmem:[%s3360_s14 + $0x18] sm:$0xff] %vm1464_vm0, %v2256_v29  ;;  %v1404_v42 = vpop.f32.mrb[67].mxu0 }
 0x44e   : > { %1466 = vst.msk [vmem:[%s3360_s14 + $0x8] sm:$0xff] %vm1464_vm0, %v1404_v42 }
 0x452   : > { %v2259_v46 = vpop.f32.mrb[68].mxu0 }
 0x453   : > { %1471 = vst.msk [vmem:[%s3360_s14 + $0x30] sm:$0xff] %vm1464_vm0, %v2259_v46  ;;  %v1417_v50 = vpop.f32.mrb[69].mxu0 }
 0x454   : > { %1469 = vst.msk [vmem:[%s3360_s14 + $0x20] sm:$0xff] %vm1464_vm0, %v1417_v50  ;;  %v2260_v41 = vpop.f32.mrb[70].mxu0 }
 0x455   : > { %1472 = vst.msk [vmem:[%s3360_s14 + $0x38] sm:$0xff] %vm1464_vm0, %v2260_v41  ;;  %v1420_v28 = vpop.f32.mrb[71].mxu0 }
 0x456   : > { %1470 = vst.msk [vmem:[%s3360_s14 + $0x28] sm:$0xff] %vm1464_vm0, %v1420_v28 }
 0x45a   : > { %v2263_v6 = vpop.f32.mrb[72].mxu0 }
 0x45b   : > { %1475 = vst.msk [vmem:[%s3360_s14 + $0x50] sm:$0xff] %vm1464_vm0, %v2263_v6  ;;  %v1433_v52 = vpop.f32.mrb[73].mxu0 }
 0x45c   : > { %1473 = vst.msk [vmem:[%s3360_s14 + $0x40] sm:$0xff] %vm1464_vm0, %v1433_v52  ;;  %v2264_v4 = vpop.f32.mrb[74].mxu0 }
 0x45d   : > { %1476 = vst.msk [vmem:[%s3360_s14 + $0x58] sm:$0xff] %vm1464_vm0, %v2264_v4  ;;  %v1436_v3 = vpop.f32.mrb[75].mxu0 }
 0x45e   : > { %1474 = vst.msk [vmem:[%s3360_s14 + $0x48] sm:$0xff] %vm1464_vm0, %v1436_v3 }
 0x462   : > { %v2267_v9 = vpop.f32.mrb[76].mxu0 }
 0x463   : > { %1479 = vst.msk [vmem:[%s3360_s14 + $0x70] sm:$0xff] %vm1464_vm0, %v2267_v9  ;;  %v1449_v24 = vpop.f32.mrb[77].mxu0 }
 0x464   : > { %1477 = vst.msk [vmem:[%s3360_s14 + $0x60] sm:$0xff] %vm1464_vm0, %v1449_v24  ;;  %v2268_v13 = vpop.f32.mrb[78].mxu0 }
 0x465   : > { %1480 = vst.msk [vmem:[%s3360_s14 + $0x78] sm:$0xff] %vm1464_vm0, %v2268_v13  ;;  %v1452_v8 = vpop.f32.mrb[79].mxu0 }
 0x466   : > { %1478 = vst.msk [vmem:[%s3360_s14 + $0x68] sm:$0xff] %vm1464_vm0, %v1452_v8 }
 0x488   : > { %v2319_v58 = vpop.f32.mrb[80].mxu0 }
 0x489   : > { %2011 = vst.msk [vmem:[%s3360_s14 + $0x90] sm:$0xff] %vm1464_vm0, %v2319_v58  ;;  %v1780_v45 = vpop.f32.mrb[81].mxu0 }
 0x48a   : > { %2009 = vst.msk [vmem:[%s3360_s14 + $0x80] sm:$0xff] %vm1464_vm0, %v1780_v45  ;;  %v2320_v31 = vpop.f32.mrb[82].mxu0 }
 0x48b   : > { %2012 = vst.msk [vmem:[%s3360_s14 + $0x98] sm:$0xff] %vm1464_vm0, %v2320_v31  ;;  %v1783_v37 = vpop.f32.mrb[83].mxu0 }
 0x48c   : > { %2010 = vst.msk [vmem:[%s3360_s14 + $0x88] sm:$0xff] %vm1464_vm0, %v1783_v37 }
 0x490   : > { %v2323_v26 = vpop.f32.mrb[84].mxu0 }
 0x491   : > { %2015 = vst.msk [vmem:[%s3360_s14 + $0xb0] sm:$0xff] %vm1464_vm0, %v2323_v26  ;;  %v1796_v27 = vpop.f32.mrb[85].mxu0 }
 0x492   : > { %2013 = vst.msk [vmem:[%s3360_s14 + $0xa0] sm:$0xff] %vm1464_vm0, %v1796_v27  ;;  %v2324_v61 = vpop.f32.mrb[86].mxu0 }
 0x493   : > { %2016 = vst.msk [vmem:[%s3360_s14 + $0xb8] sm:$0xff] %vm1464_vm0, %v2324_v61  ;;  %v1799_v5 = vpop.f32.mrb[87].mxu0 }
 0x494   : > { %2014 = vst.msk [vmem:[%s3360_s14 + $0xa8] sm:$0xff] %vm1464_vm0, %v1799_v5 }
 0x498   : > { %v2327_v53 = vpop.f32.mrb[88].mxu0 }
 0x499   : > { %2019 = vst.msk [vmem:[%s3360_s14 + $0xd0] sm:$0xff] %vm1464_vm0, %v2327_v53  ;;  %v1812_v12 = vpop.f32.mrb[89].mxu0 }
 0x49a   : > { %2017 = vst.msk [vmem:[%s3360_s14 + $0xc0] sm:$0xff] %vm1464_vm0, %v1812_v12  ;;  %v2328_v54 = vpop.f32.mrb[90].mxu0 }
 0x49b   : > { %2020 = vst.msk [vmem:[%s3360_s14 + $0xd8] sm:$0xff] %vm1464_vm0, %v2328_v54  ;;  %v1815_v56 = vpop.f32.mrb[91].mxu0 }
 0x49c   : > { %2018 = vst.msk [vmem:[%s3360_s14 + $0xc8] sm:$0xff] %vm1464_vm0, %v1815_v56 }
 0x4a0   : > { %v2331_v16 = vpop.f32.mrb[92].mxu0 }
 0x4a1   : > { %2023 = vst.msk [vmem:[%s3360_s14 + $0xf0] sm:$0xff] %vm1464_vm0, %v2331_v16  ;;  %v1828_v44 = vpop.f32.mrb[93].mxu0 }
 0x4a2   : > { %2021 = vst.msk [vmem:[%s3360_s14 + $0xe0] sm:$0xff] %vm1464_vm0, %v1828_v44  ;;  %v2332_v63 = vpop.f32.mrb[94].mxu0 }
 0x4a3   : > { %2024 = vst.msk [vmem:[%s3360_s14 + $0xf8] sm:$0xff] %vm1464_vm0, %v2332_v63  ;;  %v1831_v33 = vpop.f32.mrb[95].mxu0 }
 0x4a4   : > { %2022 = vst.msk [vmem:[%s3360_s14 + $0xe8] sm:$0xff] %vm1464_vm0, %v1831_v33 }
 0x4a5 PF: > { %s12_s9 = sadd.s32 1, %s2587_s9  }
 0x4a6   : > { %p9_p4 = scmp.ge.s32.totalorder %s12_s9, 4  }
 0x4a8   :  { %11 = sbr.rel (!%p9_p4) target bundleno = 1 (0x1), region = 59 }

</bundles_post_ra>
